<compile_context>
chip_gen: v7x
topology: tpu7x:2x2x1
jax: 0.10.0
libtpu: 0.0.40
codegen_flags: <defaults>
</compile_context>

<pallas_src>
import jax
import jax.numpy as jnp
from jax.experimental import pallas as pl
from jax.experimental.pallas import tpu as pltpu

LEAKY_SLOPE = 0.01                      # nn.LeakyReLU() default negative_slope
LANE = 128
VMEM_LIMIT_BYTES = 48 * 1024 * 1024     # explicit scoped-VMEM request (v5e default: 16 MiB)
TILE_VMEM_BUDGET = 32 * 1024 * 1024     # budget used when clamping the batch tile


def _round_up(x, m):
    return ((x + m - 1) // m) * m


def _leaky_relu(x):
    return jnp.where(x > 0, x, LEAKY_SLOPE * x)


# ---------------------------------------------------------------------------
# Kernel: one batch tile of the full fused MLP (3 MXU matmuls + epilogues).
# ---------------------------------------------------------------------------
def classifier_kernel(x_ref,
                      w1_ref, b1_ref,
                      w2_ref, b2_ref,
                      w3_ref, b3_ref,
                      out_ref):
    # ---- layer 1: Linear + (folded) BatchNorm + LeakyReLU ----
    x = x_ref[...].astype(w1_ref.dtype)           # f32 -> bf16 in VMEM (cheap VPU pack)
    h = jnp.dot(x, w1_ref[...], preferred_element_type=jnp.float32)
    h = _leaky_relu(h + b1_ref[...])
    # Dropout(p=0.1) in eval mode == identity.

    # ---- layer 2: Linear + (folded) BatchNorm + LeakyReLU ----
    h = jnp.dot(h.astype(w2_ref.dtype), w2_ref[...],
                preferred_element_type=jnp.float32)
    h = _leaky_relu(h + b2_ref[...])

    # ---- layer 3: Linear (output columns zero-padded to 128 lanes) ----
    logits = jnp.dot(h.astype(w3_ref.dtype), w3_ref[...],
                     preferred_element_type=jnp.float32)
    out_ref[...] = (logits + b3_ref[...]).astype(out_ref.dtype)


# ---------------------------------------------------------------------------
# Tiling / pallas_call construction
# ---------------------------------------------------------------------------
def _choose_bm(B, D, C_pad, H1, H2, weight_bytes, block_m):
    # Start from the requested tile, never larger than the (16-rounded) batch.
    bm = min(block_m, _round_up(B, 16))
    # v7x megacore: make sure the "parallel" grid axis has >= 2 steps whenever the
    # batch is large enough to split across both TensorCores.
    if B >= 32 and pl.cdiv(B, bm) < 2:
        bm = max(16, _round_up(pl.cdiv(B, 2), 16))
    # Clamp so double-buffered f32 x tile + bf16 out tile + f32/bf16 hidden
    # activations fit the VMEM budget (single-buffered weights counted separately).
    per_row = 2 * D * 4 + 2 * C_pad * 2 + (H1 + H2) * (4 + 2)
    avail = max(TILE_VMEM_BUDGET - weight_bytes, 16 * per_row)
    bm_fit = max(16, (avail // per_row) // 16 * 16)
    return int(min(bm, bm_fit))


def _build_call(B, D, H1, H2, C_pad, bm, single_buffer_weights):
    grid = (pl.cdiv(B, bm),)             # ragged last tile is masked by Pallas

    def const_spec(shape):
        kwargs = {}
        if single_buffer_weights:
            # Grid-invariant operands: fetched once, one VMEM buffer is enough.
            kwargs["pipeline_mode"] = pl.Buffered(1)
        return pl.BlockSpec(shape, lambda i, _n=len(shape): (0,) * _n, **kwargs)

    in_specs = [
        pl.BlockSpec((bm, D), lambda i: (i, 0)),            # x tile (f32; cast in-kernel)
        const_spec((D, H1)), const_spec((1, H1)),           # w1', b1'  (BN folded)
        const_spec((H1, H2)), const_spec((1, H2)),          # w2', b2'  (BN folded)
        const_spec((H2, C_pad)), const_spec((1, C_pad)),    # w3,  b3   (lane-padded)
    ]
    out_spec = pl.BlockSpec((bm, C_pad), lambda i: (i, 0))

    return pl.pallas_call(
        classifier_kernel,
        out_shape=jax.ShapeDtypeStruct((B, C_pad), jnp.bfloat16),
        grid=grid,
        in_specs=in_specs,
        out_specs=out_spec,
        compiler_params=pltpu.CompilerParams(
            dimension_semantics=("parallel",),
            vmem_limit_bytes=VMEM_LIMIT_BYTES,
        ),
    )


def simple_classifier_forward(x, fused, *, block_m=1024):
    """x: (B, embedding_dim) f32. fused: kernel-ready params from fold_params()."""
    B, D = x.shape
    D_w, H1 = fused["w1"].shape
    H2, C_pad = fused["w3"].shape
    C = fused["num_classes"]
    assert D == D_w, (D, D_w)

    weight_bytes = 2 * (D * H1 + H1 * H2 + H2 * C_pad)      # bf16 weights
    bm = _choose_bm(B, D, C_pad, H1, H2, weight_bytes, block_m)

    args = (x,
            fused["w1"], fused["b1"],
            fused["w2"], fused["b2"],
            fused["w3"], fused["b3"])
    try:
        out = _build_call(B, D, H1, H2, C_pad, bm, single_buffer_weights=True)(*args)
    except Exception:
        # pl.Buffered(1) unsupported on this JAX/Mosaic version: fall back to the
        # default double-buffered weight specs (identical numerics).
        out = _build_call(B, D, H1, H2, C_pad, bm, single_buffer_weights=False)(*args)

    return out[:, :C].astype(jnp.float32)


# ---------------------------------------------------------------------------
# Parameter construction (PyTorch-like) and BN/pad folding for the kernel.
# ---------------------------------------------------------------------------
def init_params(key, embedding_dim, num_classes):
    """Synthetic params mirroring SimpleClassifier shapes. Linear weights are
    stored pre-transposed as (in, out). BatchNorm stats are non-trivial so the
    fold is actually exercised."""
    k1, k2, k3, kbn = jax.random.split(key, 4)

    def linear(k, fan_in, fan_out):
        lim = 1.0 / jnp.sqrt(fan_in)
        kw, kb = jax.random.split(k)
        w = jax.random.uniform(kw, (fan_in, fan_out), jnp.float32, -lim, lim)
        b = jax.random.uniform(kb, (1, fan_out), jnp.float32, -lim, lim)
        return w, b

    def bn_stats(k, n):
        kg, kb, km, kv = jax.random.split(k, 4)
        gamma = jax.random.uniform(kg, (1, n), jnp.float32, 0.5, 1.5)
        beta = 0.1 * jax.random.normal(kb, (1, n), jnp.float32)
        mean = 0.1 * jax.random.normal(km, (1, n), jnp.float32)
        var = jax.random.uniform(kv, (1, n), jnp.float32, 0.5, 1.5)
        return dict(gamma=gamma, beta=beta, mean=mean, var=var)

    w1, b1 = linear(k1, embedding_dim, 512)
    w2, b2 = linear(k2, 512, 256)
    w3, b3 = linear(k3, 256, num_classes)
    kbn1, kbn2 = jax.random.split(kbn)

    return dict(w1=w1, b1=b1, bn1=bn_stats(kbn1, 512),
                w2=w2, b2=b2, bn2=bn_stats(kbn2, 256),
                w3=w3, b3=b3, num_classes=num_classes,
                embedding_dim=embedding_dim)


def fold_params(p, eps=1e-5):
    """Fold eval-mode BatchNorm into the preceding Linear, pad num_classes to a
    128-lane multiple, and cast weights to bf16 (biases stay f32)."""
    def bn_scale_shift(bn):
        scale = bn["gamma"] / jnp.sqrt(bn["var"] + eps)
        shift = bn["beta"] - bn["mean"] * scale
        return scale, shift

    s1, t1 = bn_scale_shift(p["bn1"])
    s2, t2 = bn_scale_shift(p["bn2"])

    w1f = p["w1"] * s1                      # (D, 512)
    b1f = p["b1"] * s1 + t1                 # (1, 512)
    w2f = p["w2"] * s2                      # (512, 256)
    b2f = p["b2"] * s2 + t2                 # (1, 256)

    C = p["num_classes"]
    C_pad = _round_up(C, LANE)
    w3f = jnp.pad(p["w3"], ((0, 0), (0, C_pad - C)))        # zero cols: sliced off
    b3f = jnp.pad(p["b3"], ((0, 0), (0, C_pad - C)))

    return dict(
        w1=w1f.astype(jnp.bfloat16), b1=b1f.astype(jnp.float32),
        w2=w2f.astype(jnp.bfloat16), b2=b2f.astype(jnp.float32),
        w3=w3f.astype(jnp.bfloat16), b3=b3f.astype(jnp.float32),
        num_classes=C,
    )


# ---------------------------------------------------------------------------
# Pure-JAX f32 reference (unfolded BN, eval-mode dropout) for correctness.
# ---------------------------------------------------------------------------
def reference_forward(x, p, eps=1e-5):
    def bn(h, stats):
        return (h - stats["mean"]) / jnp.sqrt(stats["var"] + eps) \
               * stats["gamma"] + stats["beta"]

    h = x @ p["w1"] + p["b1"]
    h = _leaky_relu(bn(h, p["bn1"]))
    h = h @ p["w2"] + p["b2"]
    h = _leaky_relu(bn(h, p["bn2"]))
    return h @ p["w3"] + p["b3"]


if __name__ == "__main__":
    key = jax.random.PRNGKey(0)
    k_param, k_x1, k_x2 = jax.random.split(key, 3)

    embedding_dim = 32
    num_classes = 10

    params = init_params(k_param, embedding_dim, num_classes)
    fused = fold_params(params)

    # Small batch: single (ragged) grid step.
    x_small = jax.random.normal(k_x1, (8, embedding_dim), jnp.float32)
    logits_small = jax.block_until_ready(simple_classifier_forward(x_small, fused))
    ref_small = reference_forward(x_small, params)
    assert logits_small.shape == (8, num_classes), logits_small.shape
    err = float(jnp.max(jnp.abs(logits_small - ref_small)))
    # bf16 matmul operands + bf16 logits vs f32 reference -> loose tolerance
    assert jnp.allclose(logits_small, ref_small, atol=1e-1, rtol=1e-1), err

    # Larger ragged batch: exercises the 2-step "parallel" grid + masked last tile.
    x_big = jax.random.normal(k_x2, (100, embedding_dim), jnp.float32)
    logits_big = jax.block_until_ready(simple_classifier_forward(x_big, fused))
    ref_big = reference_forward(x_big, params)
    assert logits_big.shape == (100, num_classes), logits_big.shape
    err_big = float(jnp.max(jnp.abs(logits_big - ref_big)))
    assert jnp.allclose(logits_big, ref_big, atol=1e-1, rtol=1e-1), err_big

    print("KERNEL_OK")
</pallas_src>

<mosaic_0001>
module attributes {stable_mosaic.version = 11 : i64} {
  func.func @classifier_kernel(%arg0: i32, %arg1: memref<16x32xf32, #tpu.memory_space<vmem>>, %arg2: memref<32x512xbf16, #tpu.memory_space<vmem>>, %arg3: memref<1x512xf32, #tpu.memory_space<vmem>>, %arg4: memref<512x256xbf16, #tpu.memory_space<vmem>>, %arg5: memref<1x256xf32, #tpu.memory_space<vmem>>, %arg6: memref<256x128xbf16, #tpu.memory_space<vmem>>, %arg7: memref<1x128xf32, #tpu.memory_space<vmem>>, %arg8: memref<16x128xbf16, #tpu.memory_space<vmem>>) attributes {dimension_semantics = [#tpu.dimension_semantics<parallel>], iteration_bounds = array<i64: 1>, scalar_prefetch = 0 : i64, scratch_operands = 0 : i64, tpu.core_type = #tpu.core_type<tc>, window_params = [{transform_indices = @transform_0, window_bounds = array<i64: 16, 32>}, {pipeline_mode = #tpu.pipeline_mode<synchronous>, transform_indices = @transform_1, window_bounds = array<i64: 32, 512>}, {pipeline_mode = #tpu.pipeline_mode<synchronous>, transform_indices = @transform_2, window_bounds = array<i64: 1, 512>}, {pipeline_mode = #tpu.pipeline_mode<synchronous>, transform_indices = @transform_3, window_bounds = array<i64: 512, 256>}, {pipeline_mode = #tpu.pipeline_mode<synchronous>, transform_indices = @transform_4, window_bounds = array<i64: 1, 256>}, {pipeline_mode = #tpu.pipeline_mode<synchronous>, transform_indices = @transform_5, window_bounds = array<i64: 256, 128>}, {pipeline_mode = #tpu.pipeline_mode<synchronous>, transform_indices = @transform_6, window_bounds = array<i64: 1, 128>}, {transform_indices = @transform_7, window_bounds = array<i64: 16, 128>}]} {
    %c0 = arith.constant 0 : index
    %c0_0 = arith.constant 0 : index
    %0 = vector.load %arg1[%c0, %c0_0] : memref<16x32xf32, #tpu.memory_space<vmem>>, vector<16x32xf32>
    %1 = arith.truncf %0 : vector<16x32xf32> to vector<16x32xbf16>
    %c0_1 = arith.constant 0 : index
    %c0_2 = arith.constant 0 : index
    %2 = vector.load %arg2[%c0_1, %c0_2] : memref<32x512xbf16, #tpu.memory_space<vmem>>, vector<32x512xbf16>
    %cst = arith.constant dense<0.000000e+00> : vector<16x512xf32>
    %3 = tpu.matmul %1, %2, %cst {dimension_numbers = #tpu.dot_dimension_numbers<[1], [0], [0], [1], [0, 0, 1, 1], [], []>} : vector<16x32xbf16>, vector<32x512xbf16>, vector<16x512xf32> -> vector<16x512xf32>
    %c0_3 = arith.constant 0 : index
    %c0_4 = arith.constant 0 : index
    %4 = vector.load %arg3[%c0_3, %c0_4] : memref<1x512xf32, #tpu.memory_space<vmem>>, vector<1x512xf32>
    %5 = vector.broadcast %4 : vector<1x512xf32> to vector<16x512xf32>
    %6 = arith.addf %3, %5 : vector<16x512xf32>
    %cst_5 = arith.constant 0.000000e+00 : f32
    %7 = vector.broadcast %cst_5 : f32 to vector<16x512xf32>
    %8 = arith.cmpf ogt, %6, %7 : vector<16x512xf32>
    %cst_6 = arith.constant 0.00999999977 : f32
    %9 = vector.broadcast %cst_6 : f32 to vector<16x512xf32>
    %10 = arith.mulf %9, %6 : vector<16x512xf32>
    %11 = arith.select %8, %6, %10 : vector<16x512xi1>, vector<16x512xf32>
    %12 = arith.truncf %11 : vector<16x512xf32> to vector<16x512xbf16>
    %c0_7 = arith.constant 0 : index
    %c0_8 = arith.constant 0 : index
    %13 = vector.load %arg4[%c0_7, %c0_8] : memref<512x256xbf16, #tpu.memory_space<vmem>>, vector<512x256xbf16>
    %cst_9 = arith.constant dense<0.000000e+00> : vector<16x256xf32>
    %14 = tpu.matmul %12, %13, %cst_9 {dimension_numbers = #tpu.dot_dimension_numbers<[1], [0], [0], [1], [0, 0, 1, 1], [], []>} : vector<16x512xbf16>, vector<512x256xbf16>, vector<16x256xf32> -> vector<16x256xf32>
    %c0_10 = arith.constant 0 : index
    %c0_11 = arith.constant 0 : index
    %15 = vector.load %arg5[%c0_10, %c0_11] : memref<1x256xf32, #tpu.memory_space<vmem>>, vector<1x256xf32>
    %16 = vector.broadcast %15 : vector<1x256xf32> to vector<16x256xf32>
    %17 = arith.addf %14, %16 : vector<16x256xf32>
    %cst_12 = arith.constant 0.000000e+00 : f32
    %18 = vector.broadcast %cst_12 : f32 to vector<16x256xf32>
    %19 = arith.cmpf ogt, %17, %18 : vector<16x256xf32>
    %cst_13 = arith.constant 0.00999999977 : f32
    %20 = vector.broadcast %cst_13 : f32 to vector<16x256xf32>
    %21 = arith.mulf %20, %17 : vector<16x256xf32>
    %22 = arith.select %19, %17, %21 : vector<16x256xi1>, vector<16x256xf32>
    %23 = arith.truncf %22 : vector<16x256xf32> to vector<16x256xbf16>
    %c0_14 = arith.constant 0 : index
    %c0_15 = arith.constant 0 : index
    %24 = vector.load %arg6[%c0_14, %c0_15] : memref<256x128xbf16, #tpu.memory_space<vmem>>, vector<256x128xbf16>
    %cst_16 = arith.constant dense<0.000000e+00> : vector<16x128xf32>
    %25 = tpu.matmul %23, %24, %cst_16 {dimension_numbers = #tpu.dot_dimension_numbers<[1], [0], [0], [1], [0, 0, 1, 1], [], []>} : vector<16x256xbf16>, vector<256x128xbf16>, vector<16x128xf32> -> vector<16x128xf32>
    %c0_17 = arith.constant 0 : index
    %c0_18 = arith.constant 0 : index
    %26 = vector.load %arg7[%c0_17, %c0_18] : memref<1x128xf32, #tpu.memory_space<vmem>>, vector<1x128xf32>
    %27 = vector.broadcast %26 : vector<1x128xf32> to vector<16x128xf32>
    %28 = arith.addf %25, %27 : vector<16x128xf32>
    %29 = arith.truncf %28 : vector<16x128xf32> to vector<16x128xbf16>
    %c0_19 = arith.constant 0 : index
    %c0_20 = arith.constant 0 : index
    %30 = vector.load %arg8[%c0_19, %c0_20] : memref<16x128xbf16, #tpu.memory_space<vmem>>, vector<16x128xbf16>
    tpu.vector_store %arg8[%c0_19, %c0_20], %29 {strides = array<i32>} : memref<16x128xbf16, #tpu.memory_space<vmem>>, vector<16x128xbf16>,
    return
  }
  func.func @transform_0(%arg0: i32) -> (i32, i32) {
    %c0_i32 = arith.constant 0 : i32
    %c0_i32_0 = arith.constant 0 : i32
    return %arg0, %c0_i32 : i32, i32
  }
  func.func @transform_1(%arg0: i32) -> (i32, i32) {
    %c0_i32 = arith.constant 0 : i32
    %c0_i32_0 = arith.constant 0 : i32
    %c0_i32_1 = arith.constant 0 : i32
    return %c0_i32, %c0_i32_0 : i32, i32
  }
  func.func @transform_2(%arg0: i32) -> (i32, i32) {
    %c0_i32 = arith.constant 0 : i32
    %c0_i32_0 = arith.constant 0 : i32
    %c0_i32_1 = arith.constant 0 : i32
    return %c0_i32, %c0_i32_0 : i32, i32
  }
  func.func @transform_3(%arg0: i32) -> (i32, i32) {
    %c0_i32 = arith.constant 0 : i32
    %c0_i32_0 = arith.constant 0 : i32
    %c0_i32_1 = arith.constant 0 : i32
    return %c0_i32, %c0_i32_0 : i32, i32
  }
  func.func @transform_4(%arg0: i32) -> (i32, i32) {
    %c0_i32 = arith.constant 0 : i32
    %c0_i32_0 = arith.constant 0 : i32
    %c0_i32_1 = arith.constant 0 : i32
    return %c0_i32, %c0_i32_0 : i32, i32
  }
  func.func @transform_5(%arg0: i32) -> (i32, i32) {
    %c0_i32 = arith.constant 0 : i32
    %c0_i32_0 = arith.constant 0 : i32
    %c0_i32_1 = arith.constant 0 : i32
    return %c0_i32, %c0_i32_0 : i32, i32
  }
  func.func @transform_6(%arg0: i32) -> (i32, i32) {
    %c0_i32 = arith.constant 0 : i32
    %c0_i32_0 = arith.constant 0 : i32
    %c0_i32_1 = arith.constant 0 : i32
    return %c0_i32, %c0_i32_0 : i32, i32
  }
  func.func @transform_7(%arg0: i32) -> (i32, i32) {
    %c0_i32 = arith.constant 0 : i32
    %c0_i32_0 = arith.constant 0 : i32
    return %arg0, %c0_i32 : i32, i32
  }
}

module attributes {stable_mosaic.version = 11 : i64} {
  func.func @classifier_kernel(%arg0: i32, %arg1: memref<16x32xf32, #tpu.memory_space<vmem>>, %arg2: memref<32x512xbf16, #tpu.memory_space<vmem>>, %arg3: memref<1x512xf32, #tpu.memory_space<vmem>>, %arg4: memref<512x256xbf16, #tpu.memory_space<vmem>>, %arg5: memref<1x256xf32, #tpu.memory_space<vmem>>, %arg6: memref<256x128xbf16, #tpu.memory_space<vmem>>, %arg7: memref<1x128xf32, #tpu.memory_space<vmem>>, %arg8: memref<16x128xbf16, #tpu.memory_space<vmem>>) attributes {dimension_semantics = [#tpu.dimension_semantics<parallel>], iteration_bounds = array<i64: 1>, scalar_prefetch = 0 : i64, scratch_operands = 0 : i64, tpu.core_type = #tpu.core_type<tc>, window_params = [{transform_indices = @transform_0, window_bounds = array<i64: 16, 32>}, {pipeline_mode = #tpu.pipeline_mode<synchronous>, transform_indices = @transform_1, window_bounds = array<i64: 32, 512>}, {pipeline_mode = #tpu.pipeline_mode<synchronous>, transform_indices = @transform_2, window_bounds = array<i64: 1, 512>}, {pipeline_mode = #tpu.pipeline_mode<synchronous>, transform_indices = @transform_3, window_bounds = array<i64: 512, 256>}, {pipeline_mode = #tpu.pipeline_mode<synchronous>, transform_indices = @transform_4, window_bounds = array<i64: 1, 256>}, {pipeline_mode = #tpu.pipeline_mode<synchronous>, transform_indices = @transform_5, window_bounds = array<i64: 256, 128>}, {pipeline_mode = #tpu.pipeline_mode<synchronous>, transform_indices = @transform_6, window_bounds = array<i64: 1, 128>}, {transform_indices = @transform_7, window_bounds = array<i64: 16, 128>}]} {
    %c0 = arith.constant 0 : index
    %c0_0 = arith.constant 0 : index
    %0 = vector.load %arg1[%c0, %c0_0] : memref<16x32xf32, #tpu.memory_space<vmem>>, vector<16x32xf32>
    %1 = arith.truncf %0 : vector<16x32xf32> to vector<16x32xbf16>
    %c0_1 = arith.constant 0 : index
    %c0_2 = arith.constant 0 : index
    %2 = vector.load %arg2[%c0_1, %c0_2] : memref<32x512xbf16, #tpu.memory_space<vmem>>, vector<32x512xbf16>
    %cst = arith.constant dense<0.000000e+00> : vector<16x512xf32>
    %3 = tpu.matmul %1, %2, %cst {dimension_numbers = #tpu.dot_dimension_numbers<[1], [0], [0], [1], [0, 0, 1, 1], [], []>} : vector<16x32xbf16>, vector<32x512xbf16>, vector<16x512xf32> -> vector<16x512xf32>
    %c0_3 = arith.constant 0 : index
    %c0_4 = arith.constant 0 : index
    %4 = vector.load %arg3[%c0_3, %c0_4] : memref<1x512xf32, #tpu.memory_space<vmem>>, vector<1x512xf32>
    %5 = vector.broadcast %4 : vector<1x512xf32> to vector<16x512xf32>
    %6 = arith.addf %3, %5 : vector<16x512xf32>
    %cst_5 = arith.constant 0.000000e+00 : f32
    %7 = vector.broadcast %cst_5 : f32 to vector<16x512xf32>
    %8 = arith.cmpf ogt, %6, %7 : vector<16x512xf32>
    %cst_6 = arith.constant 0.00999999977 : f32
    %9 = vector.broadcast %cst_6 : f32 to vector<16x512xf32>
    %10 = arith.mulf %9, %6 : vector<16x512xf32>
    %11 = arith.select %8, %6, %10 : vector<16x512xi1>, vector<16x512xf32>
    %12 = arith.truncf %11 : vector<16x512xf32> to vector<16x512xbf16>
    %c0_7 = arith.constant 0 : index
    %c0_8 = arith.constant 0 : index
    %13 = vector.load %arg4[%c0_7, %c0_8] : memref<512x256xbf16, #tpu.memory_space<vmem>>, vector<512x256xbf16>
    %cst_9 = arith.constant dense<0.000000e+00> : vector<16x256xf32>
    %14 = tpu.matmul %12, %13, %cst_9 {dimension_numbers = #tpu.dot_dimension_numbers<[1], [0], [0], [1], [0, 0, 1, 1], [], []>} : vector<16x512xbf16>, vector<512x256xbf16>, vector<16x256xf32> -> vector<16x256xf32>
    %c0_10 = arith.constant 0 : index
    %c0_11 = arith.constant 0 : index
    %15 = vector.load %arg5[%c0_10, %c0_11] : memref<1x256xf32, #tpu.memory_space<vmem>>, vector<1x256xf32>
    %16 = vector.broadcast %15 : vector<1x256xf32> to vector<16x256xf32>
    %17 = arith.addf %14, %16 : vector<16x256xf32>
    %cst_12 = arith.constant 0.000000e+00 : f32
    %18 = vector.broadcast %cst_12 : f32 to vector<16x256xf32>
    %19 = arith.cmpf ogt, %17, %18 : vector<16x256xf32>
    %cst_13 = arith.constant 0.00999999977 : f32
    %20 = vector.broadcast %cst_13 : f32 to vector<16x256xf32>
    %21 = arith.mulf %20, %17 : vector<16x256xf32>
    %22 = arith.select %19, %17, %21 : vector<16x256xi1>, vector<16x256xf32>
    %23 = arith.truncf %22 : vector<16x256xf32> to vector<16x256xbf16>
    %c0_14 = arith.constant 0 : index
    %c0_15 = arith.constant 0 : index
    %24 = vector.load %arg6[%c0_14, %c0_15] : memref<256x128xbf16, #tpu.memory_space<vmem>>, vector<256x128xbf16>
    %cst_16 = arith.constant dense<0.000000e+00> : vector<16x128xf32>
    %25 = tpu.matmul %23, %24, %cst_16 {dimension_numbers = #tpu.dot_dimension_numbers<[1], [0], [0], [1], [0, 0, 1, 1], [], []>} : vector<16x256xbf16>, vector<256x128xbf16>, vector<16x128xf32> -> vector<16x128xf32>
    %c0_17 = arith.constant 0 : index
    %c0_18 = arith.constant 0 : index
    %26 = vector.load %arg7[%c0_17, %c0_18] : memref<1x128xf32, #tpu.memory_space<vmem>>, vector<1x128xf32>
    %27 = vector.broadcast %26 : vector<1x128xf32> to vector<16x128xf32>
    %28 = arith.addf %25, %27 : vector<16x128xf32>
    %29 = arith.truncf %28 : vector<16x128xf32> to vector<16x128xbf16>
    %c0_19 = arith.constant 0 : index
    %c0_20 = arith.constant 0 : index
    %30 = vector.load %arg8[%c0_19, %c0_20] : memref<16x128xbf16, #tpu.memory_space<vmem>>, vector<16x128xbf16>
    tpu.vector_store %arg8[%c0_19, %c0_20], %29 {strides = array<i32>} : memref<16x128xbf16, #tpu.memory_space<vmem>>, vector<16x128xbf16>,
    return
  }
  func.func @transform_0(%arg0: i32) -> (i32, i32) {
    %c0_i32 = arith.constant 0 : i32
    %c0_i32_0 = arith.constant 0 : i32
    return %arg0, %c0_i32 : i32, i32
  }
  func.func @transform_1(%arg0: i32) -> (i32, i32) {
    %c0_i32 = arith.constant 0 : i32
    %c0_i32_0 = arith.constant 0 : i32
    %c0_i32_1 = arith.constant 0 : i32
    return %c0_i32, %c0_i32_0 : i32, i32
  }
  func.func @transform_2(%arg0: i32) -> (i32, i32) {
    %c0_i32 = arith.constant 0 : i32
    %c0_i32_0 = arith.constant 0 : i32
    %c0_i32_1 = arith.constant 0 : i32
    return %c0_i32, %c0_i32_0 : i32, i32
  }
  func.func @transform_3(%arg0: i32) -> (i32, i32) {
    %c0_i32 = arith.constant 0 : i32
    %c0_i32_0 = arith.constant 0 : i32
    %c0_i32_1 = arith.constant 0 : i32
    return %c0_i32, %c0_i32_0 : i32, i32
  }
  func.func @transform_4(%arg0: i32) -> (i32, i32) {
    %c0_i32 = arith.constant 0 : i32
    %c0_i32_0 = arith.constant 0 : i32
    %c0_i32_1 = arith.constant 0 : i32
    return %c0_i32, %c0_i32_0 : i32, i32
  }
  func.func @transform_5(%arg0: i32) -> (i32, i32) {
    %c0_i32 = arith.constant 0 : i32
    %c0_i32_0 = arith.constant 0 : i32
    %c0_i32_1 = arith.constant 0 : i32
    return %c0_i32, %c0_i32_0 : i32, i32
  }
  func.func @transform_6(%arg0: i32) -> (i32, i32) {
    %c0_i32 = arith.constant 0 : i32
    %c0_i32_0 = arith.constant 0 : i32
    %c0_i32_1 = arith.constant 0 : i32
    return %c0_i32, %c0_i32_0 : i32, i32
  }
  func.func @transform_7(%arg0: i32) -> (i32, i32) {
    %c0_i32 = arith.constant 0 : i32
    %c0_i32_0 = arith.constant 0 : i32
    return %arg0, %c0_i32 : i32, i32
  }
}

</mosaic_0001>

<bundles_post_ra>
// kernel: tpu_custom_call.1
= control target key start
LH: loop header
LB: loop body
LE: loop exit
PB: predicated region body
PF: predicated region fallthrough
CT: control target
= control target key end

     0   :  { %12 = vsyncpa [#allocation3], 0  ;;  %s1509_s0 = inlined_call_operand.hbm [shape: f32[8,32], index: 0, kind: input, shape index: {}]   ;;  %s1510_s1 = inlined_call_operand.hbm [shape: bf16[32,512], index: 1, kind: input, shape index: {}]   ;;  %s1511_s2 = inlined_call_operand.vmem [shape: f32[1,512], index: 2, kind: input, shape index: {}]   ;;  %s1512_s3 = inlined_call_operand.hbm [shape: bf16[512,256], index: 3, kind: input, shape index: {}]   ;;  %s1513_s4 = inlined_call_operand.vmem [shape: f32[1,256], index: 4, kind: input, shape index: {}]   ;;  %s1514_s5 = inlined_call_operand.hbm [shape: bf16[256,128], index: 5, kind: input, shape index: {}]   ;;  %s1515_s6 = inlined_call_operand.vmem [shape: f32[1,128], index: 6, kind: input, shape index: {}]   ;;  %s1516_s7 = inlined_call_operand.hbm [shape: bf16[8,128], index: 7, kind: output, shape index: {}]  }
   0x1   :  { %13 = vsyncpa [#allocation6], 0 }
   0x2   :  { %14 = vsyncpa [#allocation9], 0 }
   0x3   :  { %15 = vsyncpa [#allocation4], 0 }
   0x4   :  { %20 = vsyncadd [#allocation3], 128  ;;  %s1359_s24 = smov [#allocation5]   ;;  %s1241_s28 = scalar_lea.hbm %s1510_s1, 1024 }
   0x5   :  { %s33_s25 = sshll.u32 %s1359_s24, 4  ;;  %p1242_p0 = scmp.ne.s32.totalorder %s1510_s1, %s1241_s28  ;;  %s34_s25 = int_to_ptr.vmem [resolvable:$true] %s33_s25 }
   0x6   :  { %p1245_p1 = scmp.lt.u32.totalorder %s1241_s28, %s1510_s1 }
   0x8   :  { %p1247_p2 = pnand %p1245_p1, %p1242_p0 }
   0xa   :  { %1250 = shalt.err (!%p1247_p2)
}
   0xb   :  { %s1251_s10 = scalar_lea.vmem %s34_s25, 1024  ;;  %p1256_p4 = scmp.lt.s32.totalorder %s34_s25, %s34_s25 }
   0xc   :  { %p1252_p3 = scmp.ne.s32.totalorder %s34_s25, %s1251_s10  ;;  %p1257_p5 = scmp.lt.s32.totalorder %s1251_s10, %s1251_s10 }
   0xe   :  { %p1258_p6 = por %p1257_p5, %p1256_p4 }
  0x10   :  { %p1259_p7 = pnand %p1258_p6, %p1252_p3 }
  0x12   :  { %1262 = shalt.err (!%p1259_p7)
}
  0x13   :  { %s1360_s11 = smov 256   ;;  %s1361_s12 = smov 16  }
  0x14   :  { %39 = dma.hbm_to_vmem [thread:$0]  %s1510_s1, 1024, %s34_s25, [#allocation6], %s1360_s11, %s1360_s11, %s1361_s12  }
  0x15   :  { %s1362_s15 = smov [#allocation2]   ;;  %s1263_s19 = scalar_lea.hbm %s1509_s0, 128 }
  0x16   :  { %s21_s16 = sshll.u32 %s1362_s15, 4  ;;  %p1264_p8 = scmp.ne.s32.totalorder %s1509_s0, %s1263_s19  ;;  %s22_s16 = int_to_ptr.vmem [resolvable:$true] %s21_s16 }
  0x17   :  { %p1267_p9 = scmp.lt.u32.totalorder %s1263_s19, %s1509_s0 }
  0x19   :  { %p1269_p10 = pnand %p1267_p9, %p1264_p8 }
  0x1b   :  { %1272 = shalt.err (!%p1269_p10)
}
  0x1c   :  { %s1273_s24 = scalar_lea.vmem %s22_s16, 128  ;;  %s1277_s1 = scalar_lea.vmem %s22_s16, 256 }
  0x1d   :  { %p1274_p11 = scmp.ne.s32.totalorder %s22_s16, %s1273_s24  ;;  %p1278_p12 = scmp.lt.s32.totalorder %s22_s16, %s22_s16 }
  0x1e   :  { %p1279_p13 = scmp.lt.s32.totalorder %s1277_s1, %s1273_s24 }
  0x20   :  { %p1280_p0 = por %p1279_p13, %p1278_p12 }
  0x22   :  { %p1281_p1 = pnand %p1280_p0, %p1274_p11 }
  0x24   :  { %1284 = shalt.err (!%p1281_p1)
}
  0x25   :  { %s1363_s25 = smov 128   ;;  %s1364_s26 = smov 8  }
  0x26   :  { %27 = dma.hbm_to_vmem [thread:$0]  %s1509_s0, 128, %s22_s16, [#allocation3], %s1363_s25, %s1363_s25, %s1364_s26  }
  0x27   :  { %s1365_s29 = smov [#allocation7]   ;;  %s1366_s8 = smov [#allocation8]  }
  0x28   :  { %s47_s30 = sshll.u32 %s1365_s29, 4  ;;  %s61_s9 = sshll.u32 %s1366_s8, 4  ;;  %s48_s30 = int_to_ptr.vmem [resolvable:$true] %s47_s30  ;;  %s1435_s9 = int_to_ptr.vmem [resolvable:$true] %s61_s9 }
  0x29   :  { %s1285_s12 = scalar_lea.hbm %s1512_s3, 8192 }
  0x2a   :  { %p1286_p2 = scmp.ne.s32.totalorder %s1512_s3, %s1285_s12  ;;  %p1289_p3 = scmp.lt.u32.totalorder %s1285_s12, %s1512_s3 }
  0x2c   :  { %p1291_p4 = pnand %p1289_p3, %p1286_p2 }
  0x2e   :  { %1294 = shalt.err (!%p1291_p4)
}
  0x2f   :  { %s1295_s0 = scalar_lea.vmem %s48_s30, 8192  ;;  %p1300_p6 = scmp.lt.s32.totalorder %s48_s30, %s48_s30 }
  0x30   :  { %p1296_p5 = scmp.ne.s32.totalorder %s48_s30, %s1295_s0  ;;  %p1301_p7 = scmp.lt.s32.totalorder %s1295_s0, %s1295_s0 }
  0x32   :  { %p1302_p8 = por %p1301_p7, %p1300_p6 }
  0x34   :  { %p1303_p9 = pnand %p1302_p8, %p1296_p5 }
  0x36   :  { %1306 = shalt.err (!%p1303_p9)
}
  0x37   :  { %53 = dma.hbm_to_vmem [thread:$0]  %s1512_s3, 8192, %s48_s30, [#allocation6], %s1363_s25, %s1363_s25, %s1364_s26  }
  0x38   :  { %s1307_s21 = scalar_lea.hbm %s1514_s5, 2048 }
  0x39   :  { %p1308_p10 = scmp.ne.s32.totalorder %s1514_s5, %s1307_s21  ;;  %p1311_p11 = scmp.lt.u32.totalorder %s1307_s21, %s1514_s5 }
  0x3b   :  { %p1313_p12 = pnand %p1311_p11, %p1308_p10 }
  0x3d   :  { %1316 = shalt.err (!%p1313_p12)
}
  0x3e   :  { %s1317_s27 = scalar_lea.vmem %s1435_s9, 2048  ;;  %p1322_p0 = scmp.lt.s32.totalorder %s1435_s9, %s1435_s9 }
  0x3f   :  { %p1318_p13 = scmp.ne.s32.totalorder %s1435_s9, %s1317_s27  ;;  %p1323_p1 = scmp.lt.s32.totalorder %s1317_s27, %s1317_s27 }
  0x41   :  { %p1324_p2 = por %p1323_p1, %p1322_p0 }
  0x43   :  { %p1325_p3 = pnand %p1324_p2, %p1318_p13 }
  0x45   :  { %1328 = shalt.err (!%p1325_p3)
}
  0x46   :  { %s1367_s3 = smov 64   ;;  %s1368_s25 = smov 4  }
  0x47   :  { %67 = dma.hbm_to_vmem [thread:$0]  %s1514_s5, 2048, %s1435_s9, [#allocation9], %s1367_s3, %s1367_s3, %s1368_s25  }
  0x48   :  { %1351 = dma.done.wait [#allocation3], 256  }
  0x49   :  { %1352 = vsyncadd [#allocation3], 4294967040 }
  0x4a   :  { %1353 = dma.done.wait [#allocation6], 9216  }
  0x4b   :  { %1354 = vsyncadd [#allocation6], 4294958080 }
  0x4c   :  { %1355 = dma.done.wait [#allocation9], 2048  }
  0x4d   :  { %1356 = vsyncadd [#allocation9], 4294965248  ;;  %v1369_v0 = vmov 0   ;;  %v1117_v1 = vld [vmem:[#allocation5 + $0x4] ss:$16 sps:$4 sm:$0xff]   ;;  %v84_v6 = vld [vmem:[#allocation2 + $0x8] sm:$0xff] }
  0x4e   :  { %192 = vmatprep.mubr.bf16.mxu0 %v1369_v0  ;;  %v1119_v2 = vld [vmem:[#allocation5] ss:$16 sps:$4 sm:$0xff]   ;;  %160 = vmatprep.subr.bf16.mxu0 %v1117_v1  ;;  %v1120_v3 = vld [vmem:[#allocation5 + $0x24] ss:$16 sps:$4 sm:$0xff]   ;;  %v1125_v7 = vld [vmem:[#allocation5 + $0xc] ss:$16 sps:$4 sm:$0xff]  }
  0x4f   :  { %v1122_v4 = vld [vmem:[#allocation5 + $0x20] ss:$16 sps:$4 sm:$0xff]   ;;  %161 = vmatpush1.bf16.msra.mxu0 %v1119_v2  ;;  %v1123_v8 = vld [vmem:[#allocation5 + $0x8] ss:$16 sps:$4 sm:$0xff]   ;;  %v1129_v10 = vld [vmem:[#allocation7 + $0x4] ss:$8 sps:$4 sm:$0xff]  }
  0x50   :  { %v83_v5 = vld [vmem:[#allocation2] sm:$0xff]  ;;  %162 = vmatprep.subr.bf16.mxu0 %v1120_v3  ;;  %vm156_vm0 = vcmask 261120   ;;  %v1131_v11 = vld [vmem:[#allocation7] ss:$8 sps:$4 sm:$0xff]   ;;  %v1128_v12 = vld [vmem:[#allocation5 + $0x2c] ss:$16 sps:$4 sm:$0xff]   ;;  %670 = vmatprep.subr.bf16.mxu1 %v1129_v10 }
  0x51   :  { %v85_v9 = vpack.c.bf16 %v84_v6, %v83_v5  ;;  %v1132_v13 = vld [vmem:[#allocation7 + $0x14] ss:$8 sps:$4 sm:$0xff]   ;;  %671 = vmatpush1.bf16.msra.mxu1 %v1131_v11  ;;  %v1134_v14 = vld [vmem:[#allocation7 + $0x10] ss:$8 sps:$4 sm:$0xff]   ;;  %v1135_v15 = vld [vmem:[#allocation7 + $0x24] ss:$8 sps:$4 sm:$0xff]  }
  0x52   :  { %672 = vmatprep.subr.bf16.mxu1 %v1132_v13  ;;  %v1126_v16 = vld [vmem:[#allocation5 + $0x28] ss:$16 sps:$4 sm:$0xff]   ;;  %v1139_v17 = vld [vmem:[#allocation7 + $0x104] ss:$8 sps:$4 sm:$0xff]   ;;  %v1141_v19 = vld [vmem:[#allocation7 + $0x34] ss:$8 sps:$4 sm:$0xff]   ;;  %v96_v13 = vlaneseq }
  0x53   :  { %163 = vmatpush1.bf16.msra.mxu0 %v1122_v4  ;;  %v1140_v18 = vld [vmem:[#allocation7 + $0x20] ss:$8 sps:$4 sm:$0xff]   ;;  %v1145_v21 = vld [vmem:[#allocation7 + $0x114] ss:$8 sps:$4 sm:$0xff]   ;;  %v1146_v22 = vld [vmem:[#allocation7 + $0x30] ss:$8 sps:$4 sm:$0xff]  }
  0x54   :  { %203 = vmatprep.subr.bf16.mxu0 %v1125_v7  ;;  %v1137_v20 = vld [vmem:[#allocation7 + $0x100] ss:$8 sps:$4 sm:$0xff]   ;;  %v1147_v23 = vld [vmem:[#allocation7 + $0x44] ss:$8 sps:$4 sm:$0xff]   ;;  %v1143_v24 = vld [vmem:[#allocation7 + $0x110] ss:$8 sps:$4 sm:$0xff]  }
  0x55   :  { %673 = vmatpush1.bf16.msra.mxu1 %v1134_v14  ;;  %v1151_v25 = vld [vmem:[#allocation7 + $0x124] ss:$8 sps:$4 sm:$0xff]   ;;  %v1152_v26 = vld [vmem:[#allocation7 + $0x40] ss:$8 sps:$4 sm:$0xff]   ;;  %v1153_v27 = vld [vmem:[#allocation7 + $0x54] ss:$8 sps:$4 sm:$0xff]  }
  0x56   :  { %983 = vmatmul.mubr.msk.bf16.vlgmr.msra.gmra.mrb[0].mxu0 %vm156_vm0, %v85_v9  ;;  %674 = vmatprep.subr.bf16.mxu1 %v1135_v15  ;;  %v1149_v28 = vld [vmem:[#allocation7 + $0x120] ss:$8 sps:$4 sm:$0xff]   ;;  %v1157_v29 = vld [vmem:[#allocation7 + $0x134] ss:$8 sps:$4 sm:$0xff]   ;;  %v1158_v30 = vld [vmem:[#allocation7 + $0x50] ss:$8 sps:$4 sm:$0xff]  }
  0x57   :  { %204 = vmatpush1.bf16.msra.mxu0 %v1123_v8  ;;  %235 = vmatprep.mubr.bf16.mxu0 %v1369_v0  ;;  %v1159_v31 = vld [vmem:[#allocation7 + $0x64] ss:$8 sps:$4 sm:$0xff]   ;;  %v1155_v32 = vld [vmem:[#allocation7 + $0x130] ss:$8 sps:$4 sm:$0xff]   ;;  %v1164_v34 = vld [vmem:[#allocation7 + $0x60] ss:$8 sps:$4 sm:$0xff]  }
  0x58   :  { %205 = vmatprep.subr.bf16.mxu0 %v1128_v12  ;;  %v1163_v33 = vld [vmem:[#allocation7 + $0x144] ss:$8 sps:$4 sm:$0xff]   ;;  %v1165_v35 = vld [vmem:[#allocation7 + $0x74] ss:$8 sps:$4 sm:$0xff]   ;;  %v1161_v36 = vld [vmem:[#allocation7 + $0x140] ss:$8 sps:$4 sm:$0xff]  }
  0x59   :  { %675 = vmatpush1.bf16.msra.mxu1 %v1140_v18  ;;  %v1169_v37 = vld [vmem:[#allocation7 + $0x154] ss:$8 sps:$4 sm:$0xff]   ;;  %v1170_v38 = vld [vmem:[#allocation7 + $0x70] ss:$8 sps:$4 sm:$0xff]   ;;  %v1171_v39 = vld [vmem:[#allocation7 + $0x84] ss:$8 sps:$4 sm:$0xff]  }
  0x5a   :  { %676 = vmatprep.subr.bf16.mxu1 %v1141_v19  ;;  %v1167_v40 = vld [vmem:[#allocation7 + $0x150] ss:$8 sps:$4 sm:$0xff]   ;;  %v1175_v41 = vld [vmem:[#allocation7 + $0x164] ss:$8 sps:$4 sm:$0xff]   ;;  %v1173_v42 = vld [vmem:[#allocation7 + $0x160] ss:$8 sps:$4 sm:$0xff]  }
  0x5b   :  { %206 = vmatpush1.bf16.msra.mxu0 %v1126_v16  ;;  %v1176_v43 = vld [vmem:[#allocation7 + $0x80] ss:$8 sps:$4 sm:$0xff]   ;;  %v1177_v44 = vld [vmem:[#allocation7 + $0x94] ss:$8 sps:$4 sm:$0xff]   ;;  %v1182_v46 = vld [vmem:[#allocation7 + $0x90] ss:$8 sps:$4 sm:$0xff]  }
  0x5c   :  { %713 = vmatprep.subr.bf16.mxu0 %v1139_v17  ;;  %v1181_v45 = vld [vmem:[#allocation7 + $0x174] ss:$8 sps:$4 sm:$0xff]   ;;  %v1183_v47 = vld [vmem:[#allocation7 + $0xa4] ss:$8 sps:$4 sm:$0xff]   ;;  %v1179_v48 = vld [vmem:[#allocation7 + $0x170] ss:$8 sps:$4 sm:$0xff]  }
  0x5d   :  { %677 = vmatpush1.bf16.msra.mxu1 %v1146_v22  ;;  %v1187_v49 = vld [vmem:[#allocation7 + $0x184] ss:$8 sps:$4 sm:$0xff]   ;;  %v1188_v50 = vld [vmem:[#allocation7 + $0xa0] ss:$8 sps:$4 sm:$0xff]   ;;  %v1189_v51 = vld [vmem:[#allocation7 + $0xb4] ss:$8 sps:$4 sm:$0xff]  }
  0x5e   :  { %984 = vmatmul.mubr.msk.bf16.vlgmr.msra.gmra.mrb[4].mxu0 %vm156_vm0, %v85_v9  ;;  %678 = vmatprep.subr.bf16.mxu1 %v1147_v23  ;;  %v1185_v52 = vld [vmem:[#allocation7 + $0x180] ss:$8 sps:$4 sm:$0xff]   ;;  %v1193_v53 = vld [vmem:[#allocation7 + $0x194] ss:$8 sps:$4 sm:$0xff]   ;;  %v1194_v54 = vld [vmem:[#allocation7 + $0xb0] ss:$8 sps:$4 sm:$0xff]  }
  0x5f   :  { %714 = vmatpush1.bf16.msra.mxu0 %v1137_v20  ;;  %v1195_v55 = vld [vmem:[#allocation7 + $0xc4] ss:$8 sps:$4 sm:$0xff]   ;;  %v1191_v56 = vld [vmem:[#allocation7 + $0x190] ss:$8 sps:$4 sm:$0xff]   ;;  %v1200_v58 = vld [vmem:[#allocation7 + $0xc0] ss:$8 sps:$4 sm:$0xff]  }
  0x60   :  { %715 = vmatprep.subr.bf16.mxu0 %v1145_v21  ;;  %v1199_v57 = vld [vmem:[#allocation7 + $0x1a4] ss:$8 sps:$4 sm:$0xff]   ;;  %v1197_v59 = vld [vmem:[#allocation7 + $0x1a0] ss:$8 sps:$4 sm:$0xff]   ;;  %v1201_v60 = vld [vmem:[#allocation7 + $0xd4] ss:$8 sps:$4 sm:$0xff]  }
  0x61   :  { %679 = vmatpush1.bf16.msra.mxu1 %v1152_v26  ;;  %v1205_v61 = vld [vmem:[#allocation7 + $0x1b4] ss:$8 sps:$4 sm:$0xff]   ;;  %v1203_v62 = vld [vmem:[#allocation7 + $0x1b0] ss:$8 sps:$4 sm:$0xff]   ;;  %v1207_v0 = vld [vmem:[#allocation7 + $0xe4] ss:$8 sps:$4 sm:$0xff]  }
  0x62   :  { %680 = vmatprep.subr.bf16.mxu1 %v1153_v27  ;;  %v1206_v63 = vld [vmem:[#allocation7 + $0xd0] ss:$8 sps:$4 sm:$0xff]   ;;  %v1211_v1 = vld [vmem:[#allocation7 + $0x1c4] ss:$8 sps:$4 sm:$0xff]   ;;  %v1209_v2 = vld [vmem:[#allocation7 + $0x1c0] ss:$8 sps:$4 sm:$0xff]  }
  0x63   :  { %716 = vmatpush1.bf16.msra.mxu0 %v1143_v24  ;;  %v1212_v3 = vld [vmem:[#allocation7 + $0xe0] ss:$8 sps:$4 sm:$0xff]   ;;  %v1213_v4 = vld [vmem:[#allocation7 + $0xf4] ss:$8 sps:$4 sm:$0xff]   ;;  %v1215_v6 = vld [vmem:[#allocation7 + $0x1d0] ss:$8 sps:$4 sm:$0xff]  }
  0x64   :  { %717 = vmatprep.subr.bf16.mxu0 %v1151_v25  ;;  %v1217_v5 = vld [vmem:[#allocation7 + $0x1d4] ss:$8 sps:$4 sm:$0xff]   ;;  %v1218_v7 = vld [vmem:[#allocation7 + $0xf0] ss:$8 sps:$4 sm:$0xff]   ;;  %v1221_v8 = vld [vmem:[#allocation7 + $0x1e4] ss:$8 sps:$4 sm:$0xff]  }
  0x65   :  { %681 = vmatpush1.bf16.msra.mxu1 %v1158_v30  ;;  %v1219_v9 = vld [vmem:[#allocation7 + $0x1e0] ss:$8 sps:$4 sm:$0xff]   ;;  %v1224_v10 = vld [vmem:[#allocation7 + $0x1f4] ss:$8 sps:$4 sm:$0xff]   ;;  %v1222_v11 = vld [vmem:[#allocation7 + $0x1f0] ss:$8 sps:$4 sm:$0xff]  }
  0x66   :  { %682 = vmatprep.subr.bf16.mxu1 %v1159_v31  ;;  %v1225_v12 = vld [vmem:[#allocation8 + $0x40] sm:$0xff]   ;;  %v1471_v14 = vshrl.u32 %v96_v13, 7  ;;  %v94_v16 = vld [vmem:[%s1511_s2] sm:$0xf] }
  0x67   :  { %718 = vmatpush1.bf16.msra.mxu0 %v1149_v28 }
  0x68   :  { %719 = vmatprep.subr.bf16.mxu0 %v1157_v29  ;;  %v98_v15 = vsub.s32 0, %v1471_v14  ;;  %v102_v17 = vsub.s32 1, %v1471_v14  ;;  %v106_v23 = vsub.s32 2, %v1471_v14  ;;  %v110_v26 = vsub.s32 3, %v1471_v14 }
  0x69   :  { %683 = vmatpush1.bf16.msra.mxu1 %v1164_v34 }
  0x6a   :  { %684 = vmatprep.subr.bf16.mxu1 %v1165_v35  ;;  %v99_v18 = vrot.slane %v94_v16, %v98_v15  ;;  %v103_v19 = vrot.slane %v94_v16, %v102_v17  ;;  %v111_v35 = vrot.slane %v94_v16, %v110_v26 }
  0x6b   :  { %720 = vmatpush1.bf16.msra.mxu0 %v1155_v32 }
  0x6c   :  { %721 = vmatprep.subr.bf16.mxu0 %v1163_v33  ;;  %v107_v33 = vrot.slane %v94_v16, %v106_v23 }
  0x6d   :  { %685 = vmatpush1.bf16.msra.mxu1 %v1170_v38 }
  0x6e   :  { %686 = vmatprep.subr.bf16.mxu1 %v1171_v39 }
  0x6f   :  { %722 = vmatpush1.bf16.msra.mxu0 %v1161_v36 }
  0x70   :  { %723 = vmatprep.subr.bf16.mxu0 %v1169_v37 }
  0x71   :  { %687 = vmatpush1.bf16.msra.mxu1 %v1176_v43 }
  0x72   :  { %688 = vmatprep.subr.bf16.mxu1 %v1177_v44 }
  0x73   :  { %724 = vmatpush1.bf16.msra.mxu0 %v1167_v40 }
  0x74   :  { %725 = vmatprep.subr.bf16.mxu0 %v1175_v41 }
  0x75   :  { %689 = vmatpush1.bf16.msra.mxu1 %v1182_v46 }
  0x76   :  { %690 = vmatprep.subr.bf16.mxu1 %v1183_v47 }
  0x77   :  { %726 = vmatpush1.bf16.msra.mxu0 %v1173_v42 }
  0x78   :  { %727 = vmatprep.subr.bf16.mxu0 %v1181_v45  ;;  %v1226_v45 = vld [vmem:[#allocation8] sm:$0xff]  }
  0x79   :  { %691 = vmatpush1.bf16.msra.mxu1 %v1188_v50 }
  0x7a   :  { %692 = vmatprep.subr.bf16.mxu1 %v1189_v51 }
  0x7b   :  { %728 = vmatpush1.bf16.msra.mxu0 %v1179_v48  ;;  %v1227_v48 = vld [vmem:[#allocation8 + $0x48] sm:$0xff]  }
  0x7c   :  { %729 = vmatprep.subr.bf16.mxu0 %v1187_v49 }
  0x7d   :  { %693 = vmatpush1.bf16.msra.mxu1 %v1194_v54 }
  0x7e   :  { %694 = vmatprep.subr.bf16.mxu1 %v1195_v55  ;;  %v1228_v55 = vld [vmem:[#allocation8 + $0x8] sm:$0xff]  }
  0x7f   :  { %730 = vmatpush1.bf16.msra.mxu0 %v1185_v52 }
  0x80   :  { %731 = vmatprep.subr.bf16.mxu0 %v1193_v53 }
  0x81   :  { %695 = vmatpush1.bf16.msra.mxu1 %v1200_v58 }
  0x82   :  { %696 = vmatprep.subr.bf16.mxu1 %v1201_v60 }
  0x83   :  { %732 = vmatpush1.bf16.msra.mxu0 %v1191_v56 }
  0x84   :  { %733 = vmatprep.subr.bf16.mxu0 %v1199_v57  ;;  %v1229_v57 = vld [vmem:[#allocation8 + $0x50] sm:$0xff]  }
  0x85   :  { %697 = vmatpush1.bf16.msra.mxu1 %v1206_v63 }
  0x86   :  { %698 = vmatprep.subr.bf16.mxu1 %v1207_v0  ;;  %v1230_v0 = vld [vmem:[#allocation8 + $0x10] sm:$0xff]  }
  0x87   :  { %734 = vmatpush1.bf16.msra.mxu0 %v1197_v59 }
  0x88   :  { %735 = vmatprep.subr.bf16.mxu0 %v1205_v61 }
  0x89   :  { %699 = vmatpush1.bf16.msra.mxu1 %v1212_v3  ;;  %v1233_v3 = vld [vmem:[#allocation8 + $0x60] sm:$0xff]  }
  0x8a   :  { %700 = vmatprep.subr.bf16.mxu1 %v1213_v4  ;;  %v1234_v4 = vld [vmem:[#allocation8 + $0x20] sm:$0xff]  }
  0x8b   :  { %736 = vmatpush1.bf16.msra.mxu0 %v1203_v62 }
  0x8c   :  { %737 = vmatprep.subr.bf16.mxu0 %v1211_v1  ;;  %v1231_v1 = vld [vmem:[#allocation8 + $0x58] sm:$0xff]  }
  0x8d   :  { %701 = vmatpush1.bf16.msra.mxu1 %v1218_v7  ;;  %v1237_v7 = vld [vmem:[#allocation8 + $0x70] sm:$0xff]  }
  0x8e   :  { %1075 = vmatprep.subr.bf16.mxu1 %v1225_v12 }
  0x8f   :  { %738 = vmatpush1.bf16.msra.mxu0 %v1209_v2  ;;  %v1232_v2 = vld [vmem:[#allocation8 + $0x18] sm:$0xff]  }
  0x90   :  { %739 = vmatprep.subr.bf16.mxu0 %v1217_v5  ;;  %v1235_v5 = vld [vmem:[#allocation8 + $0x68] sm:$0xff]  }
  0x93   :  { %740 = vmatpush1.bf16.msra.mxu0 %v1215_v6  ;;  %v1236_v6 = vld [vmem:[#allocation8 + $0x28] sm:$0xff]  }
  0x94   :  { %741 = vmatprep.subr.bf16.mxu0 %v1221_v8  ;;  %v1238_v8 = vld [vmem:[#allocation8 + $0x30] sm:$0xff]  }
  0x97   :  { %742 = vmatpush1.bf16.msra.mxu0 %v1219_v9  ;;  %v1239_v9 = vld [vmem:[#allocation8 + $0x78] sm:$0xff]  }
  0x98   :  { %743 = vmatprep.subr.bf16.mxu0 %v1224_v10  ;;  %v1240_v10 = vld [vmem:[#allocation8 + $0x38] sm:$0xff]  }
  0x9b   :  { %744 = vmatpush1.bf16.msra.mxu0 %v1222_v11  ;;  %v338_v11 = vld [vmem:[%s1513_s4] sm:$0x3] }
 0x129   :  { %v194_v20 = vpop.f32.mrb[0].mxu0 }
 0x12a   :  { %v195_v21 = vadd.f32 %v194_v20, %v99_v18  ;;  %v196_v22 = vpop.f32.mrb[1].mxu0  ;;  %v347_v20 = vrot.slane %v338_v11, %v102_v17 }
 0x12b   :  { %v197_v24 = vadd.f32 %v196_v22, %v103_v19  ;;  %v198_v25 = vpop.f32.mrb[2].mxu0 }
 0x12c   :  { %v254_v27 = vmul.f32 0.01, %v195_v21  ;;  %v199_v28 = vadd.f32 %v198_v25, %v99_v18  ;;  %v200_v29 = vpop.f32.mrb[3].mxu0  ;;  %vm246_vm1 = vcmp.gt.f32.partialorder %v195_v21, 0.0  ;;  %v343_v18 = vrot.slane %v338_v11, %v98_v15 }
 0x12d   :  { %v255_v30 = vmul.f32 0.01, %v197_v24  ;;  %v201_v31 = vadd.f32 %v200_v29, %v103_v19  ;;  %vm247_vm3 = vcmp.gt.f32.partialorder %v197_v24, 0.0 }
 0x12e   :  { %vm250_vm2 = vcmp.gt.f32.partialorder %v199_v28, 0.0  ;;  %v258_v32 = vmul.f32 0.01, %v199_v28  ;;  %v262_v36 = vsel %vm246_vm1, %v195_v21, %v254_v27 }
 0x12f   :  { %v259_v34 = vmul.f32 0.01, %v201_v31  ;;  %vm251_vm4 = vcmp.gt.f32.partialorder %v201_v31, 0.0  ;;  %v263_v39 = vsel %vm247_vm3, %v197_v24, %v255_v30 }
 0x130   :  { %v266_v37 = vsel %vm250_vm2, %v199_v28, %v258_v32 }
 0x131   :  { %v237_v38 = vpop.f32.mrb[4].mxu0  ;;  %v267_v40 = vsel %vm251_vm4, %v201_v31, %v259_v34  ;;  %v270_v41 = vpack.c.bf16 %v266_v37, %v262_v36 }
 0x132   :  { %v238_v42 = vadd.f32 %v237_v38, %v107_v33  ;;  %v239_v43 = vpop.f32.mrb[5].mxu0  ;;  %v271_v44 = vpack.c.bf16 %v267_v40, %v263_v39 }
 0x133   :  { %v240_v46 = vadd.f32 %v239_v43, %v111_v35  ;;  %v241_v47 = vpop.f32.mrb[6].mxu0 }
 0x134   :  { %v256_v49 = vmul.f32 0.01, %v238_v42  ;;  %v242_v50 = vadd.f32 %v241_v47, %v107_v33  ;;  %v243_v51 = vpop.f32.mrb[7].mxu0  ;;  %702 = vmatprep.mubr.bf16.mxu1 %v271_v44  ;;  %vm248_vm5 = vcmp.gt.f32.partialorder %v238_v42, 0.0  ;;  %v1049_v44 = vld [vmem:[%s1515_s6] ss:$0 sm:$0xff] }
 0x135   :  { %v257_v52 = vmul.f32 0.01, %v240_v46  ;;  %v244_v53 = vadd.f32 %v243_v51, %v111_v35  ;;  %703 = vmatmul.mubr.bf16.vlgmr.msra.gmra.mrb[0].mxu1 %v270_v41  ;;  %vm249_vm6 = vcmp.gt.f32.partialorder %v240_v46, 0.0 }
 0x136   :  { %vm252_vm7 = vcmp.gt.f32.partialorder %v242_v50, 0.0  ;;  %v260_v54 = vmul.f32 0.01, %v242_v50  ;;  %1076 = vmatpush3.bf16.msra.mxu1 %v1226_v45  ;;  %v264_v58 = vsel %vm248_vm5, %v238_v42, %v256_v49 }
 0x137   :  { %vm253_vm8 = vcmp.gt.f32.partialorder %v244_v53, 0.0  ;;  %v261_v56 = vmul.f32 0.01, %v244_v53  ;;  %1077 = vmatprep.subr.bf16.mxu1 %v1227_v48  ;;  %v265_v61 = vsel %vm249_vm6, %v240_v46, %v257_v52 }
 0x138   :  { %v268_v59 = vsel %vm252_vm7, %v242_v50, %v260_v54 }
 0x139   :  { %v272_v60 = vpack.c.bf16 %v268_v59, %v264_v58  ;;  %v269_v62 = vsel %vm253_vm8, %v244_v53, %v261_v56 }
 0x13a   :  { %v273_v63 = vpack.c.bf16 %v269_v62, %v265_v61  ;;  %1078 = vmatpush3.bf16.msra.mxu1 %v1228_v55 }
 0x13b   :  { %1079 = vmatprep.subr.bf16.mxu1 %v1229_v57 }
 0x13c   :  { %745 = vmatprep.mubr.bf16.mxu0 %v273_v63 }
 0x13d   :  { %746 = vmatmul.mubr.bf16.vlgmr.msra.gmra.mrb[8].mxu0 %v272_v60 }
 0x13e   :  { %1080 = vmatpush3.bf16.msra.mxu1 %v1230_v0 }
 0x13f   :  { %1081 = vmatprep.subr.bf16.mxu1 %v1231_v1 }
 0x142   :  { %1082 = vmatpush3.bf16.msra.mxu1 %v1232_v2 }
 0x143   :  { %1083 = vmatprep.subr.bf16.mxu1 %v1233_v3 }
 0x146   :  { %1084 = vmatpush3.bf16.msra.mxu1 %v1234_v4 }
 0x147   :  { %1085 = vmatprep.subr.bf16.mxu1 %v1235_v5 }
 0x14a   :  { %1086 = vmatpush3.bf16.msra.mxu1 %v1236_v6 }
 0x14b   :  { %1087 = vmatprep.subr.bf16.mxu1 %v1237_v7 }
 0x14e   :  { %1088 = vmatpush3.bf16.msra.mxu1 %v1238_v8 }
 0x14f   :  { %1089 = vmatprep.subr.bf16.mxu1 %v1239_v9 }
 0x152   :  { %1090 = vmatpush3.bf16.msra.mxu1 %v1240_v10 }
 0x208   :  { %v704_v12 = vpop.f32.mrb[0].mxu1 }
 0x209   :  { %v706_v13 = vpop.f32.mrb[1].mxu1  ;;  %v705_v21 = vadd.f32 %v704_v12, %v343_v18 }
 0x20a   :  { %v708_v16 = vpop.f32.mrb[2].mxu1  ;;  %v707_v22 = vadd.f32 %v706_v13, %v347_v20 }
 0x20b   :  { %v710_v19 = vpop.f32.mrb[3].mxu1  ;;  %v709_v24 = vadd.f32 %v708_v16, %v343_v18 }
 0x20c   :  { %v711_v27 = vadd.f32 %v710_v19, %v347_v20 }
 0x210   :  { %v747_v23 = vpop.f32.mrb[8].mxu0 }
 0x211   :  { %v748_v25 = vadd.f32 %v747_v23, %v705_v21  ;;  %v749_v26 = vpop.f32.mrb[9].mxu0 }
 0x212   :  { %v750_v28 = vadd.f32 %v749_v26, %v707_v22  ;;  %v751_v29 = vpop.f32.mrb[10].mxu0 }
 0x213   :  { %v760_v30 = vmul.f32 0.01, %v748_v25  ;;  %v752_v31 = vadd.f32 %v751_v29, %v709_v24  ;;  %v753_v32 = vpop.f32.mrb[11].mxu0  ;;  %vm756_vm9 = vcmp.gt.f32.partialorder %v748_v25, 0.0 }
 0x214   :  { %v761_v33 = vmul.f32 0.01, %v750_v28  ;;  %v754_v34 = vadd.f32 %v753_v32, %v711_v27  ;;  %vm757_vm10 = vcmp.gt.f32.partialorder %v750_v28, 0.0 }
 0x215   :  { %vm758_vm11 = vcmp.gt.f32.partialorder %v752_v31, 0.0  ;;  %v762_v15 = vmul.f32 0.01, %v752_v31  ;;  %v764_v17 = vsel %vm756_vm9, %v748_v25, %v760_v30 }
 0x216   :  { %vm759_vm12 = vcmp.gt.f32.partialorder %v754_v34, 0.0  ;;  %v763_v14 = vmul.f32 0.01, %v754_v34  ;;  %v765_v37 = vsel %vm757_vm10, %v750_v28, %v761_v33 }
 0x217   :  { %v766_v35 = vsel %vm758_vm11, %v752_v31, %v762_v15 }
 0x218   :  { %v768_v36 = vpack.c.bf16 %v766_v35, %v764_v17  ;;  %v767_v38 = vsel %vm759_vm12, %v754_v34, %v763_v14 }
 0x219   :  { %v769_v39 = vpack.c.bf16 %v767_v38, %v765_v37 }
 0x21b   :  { %937 = vmatprep.mubr.bf16.mxu1 %v769_v39 }
 0x21c   :  { %938 = vmatmul.mubr.bf16.vlgmr.msra.gmra.mrb[4].mxu1 %v768_v36 }
 0x2ef   :  { %v1091_v40 = vpop.f32.mrb[4].mxu1 }
 0x2f0   :  { %v1092_v41 = vpop.f32.mrb[5].mxu1 }
 0x2f1   :  { %v1093_v42 = vadd.f32 %v1092_v41, %v1091_v40  ;;  %v1094_v43 = vpop.f32.mrb[6].mxu1 }
 0x2f2   :  { %v1095_v45 = vpop.f32.mrb[7].mxu1 }
 0x2f3   :  { %v1096_v46 = vadd.f32 %v1095_v45, %v1094_v43  ;;  %v940_v47 = vadd.f32 %v1093_v42, %v1049_v44 }
 0x2f5   :  { %v943_v48 = vadd.f32 %v1096_v46, %v1049_v44 }
 0x2f7   :  { %v1073_v49 = vpack.c.bf16 %v943_v48, %v940_v47 }
 0x2f9   :  { %1074 = vst [vmem:[#allocation10] sm:$0xff] %v1073_v49  }
 0x2fa   :  { %960 = vsyncadd [#allocation4], 64  ;;  %s1370_s9 = smov [#allocation10]  }
 0x2fb   :  { %s961_s10 = sshll.u32 %s1370_s9, 4  ;;  %s962_s10 = int_to_ptr.vmem [resolvable:$true] %s961_s10 }
 0x2fc   :  { %s1329_s11 = scalar_lea.vmem %s962_s10, 64  ;;  %s1333_s12 = scalar_lea.vmem %s962_s10, 128 }
 0x2fd   :  { %p1330_p4 = scmp.ne.s32.totalorder %s962_s10, %s1329_s11  ;;  %p1334_p5 = scmp.lt.s32.totalorder %s962_s10, %s962_s10 }
 0x2fe   :  { %p1335_p6 = scmp.lt.s32.totalorder %s1333_s12, %s1329_s11 }
 0x300   :  { %p1336_p7 = por %p1335_p6, %p1334_p5 }
 0x302   :  { %p1337_p8 = pnand %p1336_p7, %p1330_p4 }
 0x304   :  { %1340 = shalt.err (!%p1337_p8)
}
 0x305   :  { %s1341_s14 = scalar_lea.hbm %s1516_s7, 64 }
 0x306   :  { %p1342_p9 = scmp.ne.s32.totalorder %s1516_s7, %s1341_s14  ;;  %p1345_p10 = scmp.lt.u32.totalorder %s1341_s14, %s1516_s7 }
 0x308   :  { %p1347_p11 = pnand %p1345_p10, %p1342_p9 }
 0x30a   :  { %1350 = shalt.err (!%p1347_p11)
}
 0x30b   :  { %967 = dma.vmem_to_hbm [thread:$0]  %s962_s10, 64, %s1516_s7, [#allocation4], %s1367_s3, %s1367_s3, %s1368_s25  }
 0x30c   :  { %1357 = dma.done.wait [#allocation4], 128  }
 0x30d   :  { %1358 = vsyncadd [#allocation4], 4294967168 }
 0x30e   :  { %971 = vsyncpa [#allocation3], 1 }
 0x30f   :  { %972 = vsyncpa [#allocation6], 1 }
 0x310   :  { %973 = vsyncpa [#allocation9], 1 }
 0x311   :  { %974 = vsyncpa [#allocation4], 1 }

// kernel: tpu_custom_call.1
= control target key start
LH: loop header
LB: loop body
LE: loop exit
PB: predicated region body
PF: predicated region fallthrough
CT: control target
= control target key end

     0   :  { %12 = vsyncpa [#allocation3], 0  ;;  %s1509_s0 = inlined_call_operand.hbm [shape: f32[8,32], index: 0, kind: input, shape index: {}]   ;;  %s1510_s1 = inlined_call_operand.hbm [shape: bf16[32,512], index: 1, kind: input, shape index: {}]   ;;  %s1511_s2 = inlined_call_operand.vmem [shape: f32[1,512], index: 2, kind: input, shape index: {}]   ;;  %s1512_s3 = inlined_call_operand.hbm [shape: bf16[512,256], index: 3, kind: input, shape index: {}]   ;;  %s1513_s4 = inlined_call_operand.vmem [shape: f32[1,256], index: 4, kind: input, shape index: {}]   ;;  %s1514_s5 = inlined_call_operand.hbm [shape: bf16[256,128], index: 5, kind: input, shape index: {}]   ;;  %s1515_s6 = inlined_call_operand.vmem [shape: f32[1,128], index: 6, kind: input, shape index: {}]   ;;  %s1516_s7 = inlined_call_operand.hbm [shape: bf16[8,128], index: 7, kind: output, shape index: {}]  }
   0x1   :  { %13 = vsyncpa [#allocation6], 0 }
   0x2   :  { %14 = vsyncpa [#allocation9], 0 }
   0x3   :  { %15 = vsyncpa [#allocation4], 0 }
   0x4   :  { %20 = vsyncadd [#allocation3], 128  ;;  %s1359_s24 = smov [#allocation5]   ;;  %s1241_s28 = scalar_lea.hbm %s1510_s1, 1024 }
   0x5   :  { %s33_s25 = sshll.u32 %s1359_s24, 4  ;;  %p1242_p0 = scmp.ne.s32.totalorder %s1510_s1, %s1241_s28  ;;  %s34_s25 = int_to_ptr.vmem [resolvable:$true] %s33_s25 }
   0x6   :  { %p1245_p1 = scmp.lt.u32.totalorder %s1241_s28, %s1510_s1 }
   0x8   :  { %p1247_p2 = pnand %p1245_p1, %p1242_p0 }
   0xa   :  { %1250 = shalt.err (!%p1247_p2)
}
   0xb   :  { %s1251_s10 = scalar_lea.vmem %s34_s25, 1024  ;;  %p1256_p4 = scmp.lt.s32.totalorder %s34_s25, %s34_s25 }
   0xc   :  { %p1252_p3 = scmp.ne.s32.totalorder %s34_s25, %s1251_s10  ;;  %p1257_p5 = scmp.lt.s32.totalorder %s1251_s10, %s1251_s10 }
   0xe   :  { %p1258_p6 = por %p1257_p5, %p1256_p4 }
  0x10   :  { %p1259_p7 = pnand %p1258_p6, %p1252_p3 }
  0x12   :  { %1262 = shalt.err (!%p1259_p7)
}
  0x13   :  { %s1360_s11 = smov 256   ;;  %s1361_s12 = smov 16  }
  0x14   :  { %39 = dma.hbm_to_vmem [thread:$0]  %s1510_s1, 1024, %s34_s25, [#allocation6], %s1360_s11, %s1360_s11, %s1361_s12  }
  0x15   :  { %s1362_s15 = smov [#allocation2]   ;;  %s1263_s19 = scalar_lea.hbm %s1509_s0, 128 }
  0x16   :  { %s21_s16 = sshll.u32 %s1362_s15, 4  ;;  %p1264_p8 = scmp.ne.s32.totalorder %s1509_s0, %s1263_s19  ;;  %s22_s16 = int_to_ptr.vmem [resolvable:$true] %s21_s16 }
  0x17   :  { %p1267_p9 = scmp.lt.u32.totalorder %s1263_s19, %s1509_s0 }
  0x19   :  { %p1269_p10 = pnand %p1267_p9, %p1264_p8 }
  0x1b   :  { %1272 = shalt.err (!%p1269_p10)
}
  0x1c   :  { %s1273_s24 = scalar_lea.vmem %s22_s16, 128  ;;  %s1277_s1 = scalar_lea.vmem %s22_s16, 256 }
  0x1d   :  { %p1274_p11 = scmp.ne.s32.totalorder %s22_s16, %s1273_s24  ;;  %p1278_p12 = scmp.lt.s32.totalorder %s22_s16, %s22_s16 }
  0x1e   :  { %p1279_p13 = scmp.lt.s32.totalorder %s1277_s1, %s1273_s24 }
  0x20   :  { %p1280_p0 = por %p1279_p13, %p1278_p12 }
  0x22   :  { %p1281_p1 = pnand %p1280_p0, %p1274_p11 }
  0x24   :  { %1284 = shalt.err (!%p1281_p1)
}
  0x25   :  { %s1363_s25 = smov 128   ;;  %s1364_s26 = smov 8  }
  0x26   :  { %27 = dma.hbm_to_vmem [thread:$0]  %s1509_s0, 128, %s22_s16, [#allocation3], %s1363_s25, %s1363_s25, %s1364_s26  }
  0x27   :  { %s1365_s29 = smov [#allocation7]   ;;  %s1366_s8 = smov [#allocation8]  }
  0x28   :  { %s47_s30 = sshll.u32 %s1365_s29, 4  ;;  %s61_s9 = sshll.u32 %s1366_s8, 4  ;;  %s48_s30 = int_to_ptr.vmem [resolvable:$true] %s47_s30  ;;  %s1435_s9 = int_to_ptr.vmem [resolvable:$true] %s61_s9 }
  0x29   :  { %s1285_s12 = scalar_lea.hbm %s1512_s3, 8192 }
  0x2a   :  { %p1286_p2 = scmp.ne.s32.totalorder %s1512_s3, %s1285_s12  ;;  %p1289_p3 = scmp.lt.u32.totalorder %s1285_s12, %s1512_s3 }
  0x2c   :  { %p1291_p4 = pnand %p1289_p3, %p1286_p2 }
  0x2e   :  { %1294 = shalt.err (!%p1291_p4)
}
  0x2f   :  { %s1295_s0 = scalar_lea.vmem %s48_s30, 8192  ;;  %p1300_p6 = scmp.lt.s32.totalorder %s48_s30, %s48_s30 }
  0x30   :  { %p1296_p5 = scmp.ne.s32.totalorder %s48_s30, %s1295_s0  ;;  %p1301_p7 = scmp.lt.s32.totalorder %s1295_s0, %s1295_s0 }
  0x32   :  { %p1302_p8 = por %p1301_p7, %p1300_p6 }
  0x34   :  { %p1303_p9 = pnand %p1302_p8, %p1296_p5 }
  0x36   :  { %1306 = shalt.err (!%p1303_p9)
}
  0x37   :  { %53 = dma.hbm_to_vmem [thread:$0]  %s1512_s3, 8192, %s48_s30, [#allocation6], %s1363_s25, %s1363_s25, %s1364_s26  }
  0x38   :  { %s1307_s21 = scalar_lea.hbm %s1514_s5, 2048 }
  0x39   :  { %p1308_p10 = scmp.ne.s32.totalorder %s1514_s5, %s1307_s21  ;;  %p1311_p11 = scmp.lt.u32.totalorder %s1307_s21, %s1514_s5 }
  0x3b   :  { %p1313_p12 = pnand %p1311_p11, %p1308_p10 }
  0x3d   :  { %1316 = shalt.err (!%p1313_p12)
}
  0x3e   :  { %s1317_s27 = scalar_lea.vmem %s1435_s9, 2048  ;;  %p1322_p0 = scmp.lt.s32.totalorder %s1435_s9, %s1435_s9 }
  0x3f   :  { %p1318_p13 = scmp.ne.s32.totalorder %s1435_s9, %s1317_s27  ;;  %p1323_p1 = scmp.lt.s32.totalorder %s1317_s27, %s1317_s27 }
  0x41   :  { %p1324_p2 = por %p1323_p1, %p1322_p0 }
  0x43   :  { %p1325_p3 = pnand %p1324_p2, %p1318_p13 }
  0x45   :  { %1328 = shalt.err (!%p1325_p3)
}
  0x46   :  { %s1367_s3 = smov 64   ;;  %s1368_s25 = smov 4  }
  0x47   :  { %67 = dma.hbm_to_vmem [thread:$0]  %s1514_s5, 2048, %s1435_s9, [#allocation9], %s1367_s3, %s1367_s3, %s1368_s25  }
  0x48   :  { %1351 = dma.done.wait [#allocation3], 256  }
  0x49   :  { %1352 = vsyncadd [#allocation3], 4294967040 }
  0x4a   :  { %1353 = dma.done.wait [#allocation6], 9216  }
  0x4b   :  { %1354 = vsyncadd [#allocation6], 4294958080 }
  0x4c   :  { %1355 = dma.done.wait [#allocation9], 2048  }
  0x4d   :  { %1356 = vsyncadd [#allocation9], 4294965248  ;;  %v1369_v0 = vmov 0   ;;  %v1117_v1 = vld [vmem:[#allocation5 + $0x4] ss:$16 sps:$4 sm:$0xff]   ;;  %v84_v6 = vld [vmem:[#allocation2 + $0x8] sm:$0xff] }
  0x4e   :  { %192 = vmatprep.mubr.bf16.mxu0 %v1369_v0  ;;  %v1119_v2 = vld [vmem:[#allocation5] ss:$16 sps:$4 sm:$0xff]   ;;  %160 = vmatprep.subr.bf16.mxu0 %v1117_v1  ;;  %v1120_v3 = vld [vmem:[#allocation5 + $0x24] ss:$16 sps:$4 sm:$0xff]   ;;  %v1125_v7 = vld [vmem:[#allocation5 + $0xc] ss:$16 sps:$4 sm:$0xff]  }
  0x4f   :  { %v1122_v4 = vld [vmem:[#allocation5 + $0x20] ss:$16 sps:$4 sm:$0xff]   ;;  %161 = vmatpush1.bf16.msra.mxu0 %v1119_v2  ;;  %v1123_v8 = vld [vmem:[#allocation5 + $0x8] ss:$16 sps:$4 sm:$0xff]   ;;  %v1129_v10 = vld [vmem:[#allocation7 + $0x4] ss:$8 sps:$4 sm:$0xff]  }
  0x50   :  { %v83_v5 = vld [vmem:[#allocation2] sm:$0xff]  ;;  %162 = vmatprep.subr.bf16.mxu0 %v1120_v3  ;;  %vm156_vm0 = vcmask 261120   ;;  %v1131_v11 = vld [vmem:[#allocation7] ss:$8 sps:$4 sm:$0xff]   ;;  %v1128_v12 = vld [vmem:[#allocation5 + $0x2c] ss:$16 sps:$4 sm:$0xff]   ;;  %670 = vmatprep.subr.bf16.mxu1 %v1129_v10 }
  0x51   :  { %v85_v9 = vpack.c.bf16 %v84_v6, %v83_v5  ;;  %v1132_v13 = vld [vmem:[#allocation7 + $0x14] ss:$8 sps:$4 sm:$0xff]   ;;  %671 = vmatpush1.bf16.msra.mxu1 %v1131_v11  ;;  %v1134_v14 = vld [vmem:[#allocation7 + $0x10] ss:$8 sps:$4 sm:$0xff]   ;;  %v1135_v15 = vld [vmem:[#allocation7 + $0x24] ss:$8 sps:$4 sm:$0xff]  }
  0x52   :  { %672 = vmatprep.subr.bf16.mxu1 %v1132_v13  ;;  %v1126_v16 = vld [vmem:[#allocation5 + $0x28] ss:$16 sps:$4 sm:$0xff]   ;;  %v1139_v17 = vld [vmem:[#allocation7 + $0x104] ss:$8 sps:$4 sm:$0xff]   ;;  %v1141_v19 = vld [vmem:[#allocation7 + $0x34] ss:$8 sps:$4 sm:$0xff]   ;;  %v96_v13 = vlaneseq }
  0x53   :  { %163 = vmatpush1.bf16.msra.mxu0 %v1122_v4  ;;  %v1140_v18 = vld [vmem:[#allocation7 + $0x20] ss:$8 sps:$4 sm:$0xff]   ;;  %v1145_v21 = vld [vmem:[#allocation7 + $0x114] ss:$8 sps:$4 sm:$0xff]   ;;  %v1146_v22 = vld [vmem:[#allocation7 + $0x30] ss:$8 sps:$4 sm:$0xff]  }
  0x54   :  { %203 = vmatprep.subr.bf16.mxu0 %v1125_v7  ;;  %v1137_v20 = vld [vmem:[#allocation7 + $0x100] ss:$8 sps:$4 sm:$0xff]   ;;  %v1147_v23 = vld [vmem:[#allocation7 + $0x44] ss:$8 sps:$4 sm:$0xff]   ;;  %v1143_v24 = vld [vmem:[#allocation7 + $0x110] ss:$8 sps:$4 sm:$0xff]  }
  0x55   :  { %673 = vmatpush1.bf16.msra.mxu1 %v1134_v14  ;;  %v1151_v25 = vld [vmem:[#allocation7 + $0x124] ss:$8 sps:$4 sm:$0xff]   ;;  %v1152_v26 = vld [vmem:[#allocation7 + $0x40] ss:$8 sps:$4 sm:$0xff]   ;;  %v1153_v27 = vld [vmem:[#allocation7 + $0x54] ss:$8 sps:$4 sm:$0xff]  }
  0x56   :  { %983 = vmatmul.mubr.msk.bf16.vlgmr.msra.gmra.mrb[0].mxu0 %vm156_vm0, %v85_v9  ;;  %674 = vmatprep.subr.bf16.mxu1 %v1135_v15  ;;  %v1149_v28 = vld [vmem:[#allocation7 + $0x120] ss:$8 sps:$4 sm:$0xff]   ;;  %v1157_v29 = vld [vmem:[#allocation7 + $0x134] ss:$8 sps:$4 sm:$0xff]   ;;  %v1158_v30 = vld [vmem:[#allocation7 + $0x50] ss:$8 sps:$4 sm:$0xff]  }
  0x57   :  { %204 = vmatpush1.bf16.msra.mxu0 %v1123_v8  ;;  %235 = vmatprep.mubr.bf16.mxu0 %v1369_v0  ;;  %v1159_v31 = vld [vmem:[#allocation7 + $0x64] ss:$8 sps:$4 sm:$0xff]   ;;  %v1155_v32 = vld [vmem:[#allocation7 + $0x130] ss:$8 sps:$4 sm:$0xff]   ;;  %v1164_v34 = vld [vmem:[#allocation7 + $0x60] ss:$8 sps:$4 sm:$0xff]  }
  0x58   :  { %205 = vmatprep.subr.bf16.mxu0 %v1128_v12  ;;  %v1163_v33 = vld [vmem:[#allocation7 + $0x144] ss:$8 sps:$4 sm:$0xff]   ;;  %v1165_v35 = vld [vmem:[#allocation7 + $0x74] ss:$8 sps:$4 sm:$0xff]   ;;  %v1161_v36 = vld [vmem:[#allocation7 + $0x140] ss:$8 sps:$4 sm:$0xff]  }
  0x59   :  { %675 = vmatpush1.bf16.msra.mxu1 %v1140_v18  ;;  %v1169_v37 = vld [vmem:[#allocation7 + $0x154] ss:$8 sps:$4 sm:$0xff]   ;;  %v1170_v38 = vld [vmem:[#allocation7 + $0x70] ss:$8 sps:$4 sm:$0xff]   ;;  %v1171_v39 = vld [vmem:[#allocation7 + $0x84] ss:$8 sps:$4 sm:$0xff]  }
  0x5a   :  { %676 = vmatprep.subr.bf16.mxu1 %v1141_v19  ;;  %v1167_v40 = vld [vmem:[#allocation7 + $0x150] ss:$8 sps:$4 sm:$0xff]   ;;  %v1175_v41 = vld [vmem:[#allocation7 + $0x164] ss:$8 sps:$4 sm:$0xff]   ;;  %v1173_v42 = vld [vmem:[#allocation7 + $0x160] ss:$8 sps:$4 sm:$0xff]  }
  0x5b   :  { %206 = vmatpush1.bf16.msra.mxu0 %v1126_v16  ;;  %v1176_v43 = vld [vmem:[#allocation7 + $0x80] ss:$8 sps:$4 sm:$0xff]   ;;  %v1177_v44 = vld [vmem:[#allocation7 + $0x94] ss:$8 sps:$4 sm:$0xff]   ;;  %v1182_v46 = vld [vmem:[#allocation7 + $0x90] ss:$8 sps:$4 sm:$0xff]  }
  0x5c   :  { %713 = vmatprep.subr.bf16.mxu0 %v1139_v17  ;;  %v1181_v45 = vld [vmem:[#allocation7 + $0x174] ss:$8 sps:$4 sm:$0xff]   ;;  %v1183_v47 = vld [vmem:[#allocation7 + $0xa4] ss:$8 sps:$4 sm:$0xff]   ;;  %v1179_v48 = vld [vmem:[#allocation7 + $0x170] ss:$8 sps:$4 sm:$0xff]  }
  0x5d   :  { %677 = vmatpush1.bf16.msra.mxu1 %v1146_v22  ;;  %v1187_v49 = vld [vmem:[#allocation7 + $0x184] ss:$8 sps:$4 sm:$0xff]   ;;  %v1188_v50 = vld [vmem:[#allocation7 + $0xa0] ss:$8 sps:$4 sm:$0xff]   ;;  %v1189_v51 = vld [vmem:[#allocation7 + $0xb4] ss:$8 sps:$4 sm:$0xff]  }
  0x5e   :  { %984 = vmatmul.mubr.msk.bf16.vlgmr.msra.gmra.mrb[4].mxu0 %vm156_vm0, %v85_v9  ;;  %678 = vmatprep.subr.bf16.mxu1 %v1147_v23  ;;  %v1185_v52 = vld [vmem:[#allocation7 + $0x180] ss:$8 sps:$4 sm:$0xff]   ;;  %v1193_v53 = vld [vmem:[#allocation7 + $0x194] ss:$8 sps:$4 sm:$0xff]   ;;  %v1194_v54 = vld [vmem:[#allocation7 + $0xb0] ss:$8 sps:$4 sm:$0xff]  }
  0x5f   :  { %714 = vmatpush1.bf16.msra.mxu0 %v1137_v20  ;;  %v1195_v55 = vld [vmem:[#allocation7 + $0xc4] ss:$8 sps:$4 sm:$0xff]   ;;  %v1191_v56 = vld [vmem:[#allocation7 + $0x190] ss:$8 sps:$4 sm:$0xff]   ;;  %v1200_v58 = vld [vmem:[#allocation7 + $0xc0] ss:$8 sps:$4 sm:$0xff]  }
  0x60   :  { %715 = vmatprep.subr.bf16.mxu0 %v1145_v21  ;;  %v1199_v57 = vld [vmem:[#allocation7 + $0x1a4] ss:$8 sps:$4 sm:$0xff]   ;;  %v1197_v59 = vld [vmem:[#allocation7 + $0x1a0] ss:$8 sps:$4 sm:$0xff]   ;;  %v1201_v60 = vld [vmem:[#allocation7 + $0xd4] ss:$8 sps:$4 sm:$0xff]  }
  0x61   :  { %679 = vmatpush1.bf16.msra.mxu1 %v1152_v26  ;;  %v1205_v61 = vld [vmem:[#allocation7 + $0x1b4] ss:$8 sps:$4 sm:$0xff]   ;;  %v1203_v62 = vld [vmem:[#allocation7 + $0x1b0] ss:$8 sps:$4 sm:$0xff]   ;;  %v1207_v0 = vld [vmem:[#allocation7 + $0xe4] ss:$8 sps:$4 sm:$0xff]  }
  0x62   :  { %680 = vmatprep.subr.bf16.mxu1 %v1153_v27  ;;  %v1206_v63 = vld [vmem:[#allocation7 + $0xd0] ss:$8 sps:$4 sm:$0xff]   ;;  %v1211_v1 = vld [vmem:[#allocation7 + $0x1c4] ss:$8 sps:$4 sm:$0xff]   ;;  %v1209_v2 = vld [vmem:[#allocation7 + $0x1c0] ss:$8 sps:$4 sm:$0xff]  }
  0x63   :  { %716 = vmatpush1.bf16.msra.mxu0 %v1143_v24  ;;  %v1212_v3 = vld [vmem:[#allocation7 + $0xe0] ss:$8 sps:$4 sm:$0xff]   ;;  %v1213_v4 = vld [vmem:[#allocation7 + $0xf4] ss:$8 sps:$4 sm:$0xff]   ;;  %v1215_v6 = vld [vmem:[#allocation7 + $0x1d0] ss:$8 sps:$4 sm:$0xff]  }
  0x64   :  { %717 = vmatprep.subr.bf16.mxu0 %v1151_v25  ;;  %v1217_v5 = vld [vmem:[#allocation7 + $0x1d4] ss:$8 sps:$4 sm:$0xff]   ;;  %v1218_v7 = vld [vmem:[#allocation7 + $0xf0] ss:$8 sps:$4 sm:$0xff]   ;;  %v1221_v8 = vld [vmem:[#allocation7 + $0x1e4] ss:$8 sps:$4 sm:$0xff]  }
  0x65   :  { %681 = vmatpush1.bf16.msra.mxu1 %v1158_v30  ;;  %v1219_v9 = vld [vmem:[#allocation7 + $0x1e0] ss:$8 sps:$4 sm:$0xff]   ;;  %v1224_v10 = vld [vmem:[#allocation7 + $0x1f4] ss:$8 sps:$4 sm:$0xff]   ;;  %v1222_v11 = vld [vmem:[#allocation7 + $0x1f0] ss:$8 sps:$4 sm:$0xff]  }
  0x66   :  { %682 = vmatprep.subr.bf16.mxu1 %v1159_v31  ;;  %v1225_v12 = vld [vmem:[#allocation8 + $0x40] sm:$0xff]   ;;  %v1471_v14 = vshrl.u32 %v96_v13, 7  ;;  %v94_v16 = vld [vmem:[%s1511_s2] sm:$0xf] }
  0x67   :  { %718 = vmatpush1.bf16.msra.mxu0 %v1149_v28 }
  0x68   :  { %719 = vmatprep.subr.bf16.mxu0 %v1157_v29  ;;  %v98_v15 = vsub.s32 0, %v1471_v14  ;;  %v102_v17 = vsub.s32 1, %v1471_v14  ;;  %v106_v23 = vsub.s32 2, %v1471_v14  ;;  %v110_v26 = vsub.s32 3, %v1471_v14 }
  0x69   :  { %683 = vmatpush1.bf16.msra.mxu1 %v1164_v34 }
  0x6a   :  { %684 = vmatprep.subr.bf16.mxu1 %v1165_v35  ;;  %v99_v18 = vrot.slane %v94_v16, %v98_v15  ;;  %v103_v19 = vrot.slane %v94_v16, %v102_v17  ;;  %v111_v35 = vrot.slane %v94_v16, %v110_v26 }
  0x6b   :  { %720 = vmatpush1.bf16.msra.mxu0 %v1155_v32 }
  0x6c   :  { %721 = vmatprep.subr.bf16.mxu0 %v1163_v33  ;;  %v107_v33 = vrot.slane %v94_v16, %v106_v23 }
  0x6d   :  { %685 = vmatpush1.bf16.msra.mxu1 %v1170_v38 }
  0x6e   :  { %686 = vmatprep.subr.bf16.mxu1 %v1171_v39 }
  0x6f   :  { %722 = vmatpush1.bf16.msra.mxu0 %v1161_v36 }
  0x70   :  { %723 = vmatprep.subr.bf16.mxu0 %v1169_v37 }
  0x71   :  { %687 = vmatpush1.bf16.msra.mxu1 %v1176_v43 }
  0x72   :  { %688 = vmatprep.subr.bf16.mxu1 %v1177_v44 }
  0x73   :  { %724 = vmatpush1.bf16.msra.mxu0 %v1167_v40 }
  0x74   :  { %725 = vmatprep.subr.bf16.mxu0 %v1175_v41 }
  0x75   :  { %689 = vmatpush1.bf16.msra.mxu1 %v1182_v46 }
  0x76   :  { %690 = vmatprep.subr.bf16.mxu1 %v1183_v47 }
  0x77   :  { %726 = vmatpush1.bf16.msra.mxu0 %v1173_v42 }
  0x78   :  { %727 = vmatprep.subr.bf16.mxu0 %v1181_v45  ;;  %v1226_v45 = vld [vmem:[#allocation8] sm:$0xff]  }
  0x79   :  { %691 = vmatpush1.bf16.msra.mxu1 %v1188_v50 }
  0x7a   :  { %692 = vmatprep.subr.bf16.mxu1 %v1189_v51 }
  0x7b   :  { %728 = vmatpush1.bf16.msra.mxu0 %v1179_v48  ;;  %v1227_v48 = vld [vmem:[#allocation8 + $0x48] sm:$0xff]  }
  0x7c   :  { %729 = vmatprep.subr.bf16.mxu0 %v1187_v49 }
  0x7d   :  { %693 = vmatpush1.bf16.msra.mxu1 %v1194_v54 }
  0x7e   :  { %694 = vmatprep.subr.bf16.mxu1 %v1195_v55  ;;  %v1228_v55 = vld [vmem:[#allocation8 + $0x8] sm:$0xff]  }
  0x7f   :  { %730 = vmatpush1.bf16.msra.mxu0 %v1185_v52 }
  0x80   :  { %731 = vmatprep.subr.bf16.mxu0 %v1193_v53 }
  0x81   :  { %695 = vmatpush1.bf16.msra.mxu1 %v1200_v58 }
  0x82   :  { %696 = vmatprep.subr.bf16.mxu1 %v1201_v60 }
  0x83   :  { %732 = vmatpush1.bf16.msra.mxu0 %v1191_v56 }
  0x84   :  { %733 = vmatprep.subr.bf16.mxu0 %v1199_v57  ;;  %v1229_v57 = vld [vmem:[#allocation8 + $0x50] sm:$0xff]  }
  0x85   :  { %697 = vmatpush1.bf16.msra.mxu1 %v1206_v63 }
  0x86   :  { %698 = vmatprep.subr.bf16.mxu1 %v1207_v0  ;;  %v1230_v0 = vld [vmem:[#allocation8 + $0x10] sm:$0xff]  }
  0x87   :  { %734 = vmatpush1.bf16.msra.mxu0 %v1197_v59 }
  0x88   :  { %735 = vmatprep.subr.bf16.mxu0 %v1205_v61 }
  0x89   :  { %699 = vmatpush1.bf16.msra.mxu1 %v1212_v3  ;;  %v1233_v3 = vld [vmem:[#allocation8 + $0x60] sm:$0xff]  }
  0x8a   :  { %700 = vmatprep.subr.bf16.mxu1 %v1213_v4  ;;  %v1234_v4 = vld [vmem:[#allocation8 + $0x20] sm:$0xff]  }
  0x8b   :  { %736 = vmatpush1.bf16.msra.mxu0 %v1203_v62 }
  0x8c   :  { %737 = vmatprep.subr.bf16.mxu0 %v1211_v1  ;;  %v1231_v1 = vld [vmem:[#allocation8 + $0x58] sm:$0xff]  }
  0x8d   :  { %701 = vmatpush1.bf16.msra.mxu1 %v1218_v7  ;;  %v1237_v7 = vld [vmem:[#allocation8 + $0x70] sm:$0xff]  }
  0x8e   :  { %1075 = vmatprep.subr.bf16.mxu1 %v1225_v12 }
  0x8f   :  { %738 = vmatpush1.bf16.msra.mxu0 %v1209_v2  ;;  %v1232_v2 = vld [vmem:[#allocation8 + $0x18] sm:$0xff]  }
  0x90   :  { %739 = vmatprep.subr.bf16.mxu0 %v1217_v5  ;;  %v1235_v5 = vld [vmem:[#allocation8 + $0x68] sm:$0xff]  }
  0x93   :  { %740 = vmatpush1.bf16.msra.mxu0 %v1215_v6  ;;  %v1236_v6 = vld [vmem:[#allocation8 + $0x28] sm:$0xff]  }
  0x94   :  { %741 = vmatprep.subr.bf16.mxu0 %v1221_v8  ;;  %v1238_v8 = vld [vmem:[#allocation8 + $0x30] sm:$0xff]  }
  0x97   :  { %742 = vmatpush1.bf16.msra.mxu0 %v1219_v9  ;;  %v1239_v9 = vld [vmem:[#allocation8 + $0x78] sm:$0xff]  }
  0x98   :  { %743 = vmatprep.subr.bf16.mxu0 %v1224_v10  ;;  %v1240_v10 = vld [vmem:[#allocation8 + $0x38] sm:$0xff]  }
  0x9b   :  { %744 = vmatpush1.bf16.msra.mxu0 %v1222_v11  ;;  %v338_v11 = vld [vmem:[%s1513_s4] sm:$0x3] }
 0x129   :  { %v194_v20 = vpop.f32.mrb[0].mxu0 }
 0x12a   :  { %v195_v21 = vadd.f32 %v194_v20, %v99_v18  ;;  %v196_v22 = vpop.f32.mrb[1].mxu0  ;;  %v347_v20 = vrot.slane %v338_v11, %v102_v17 }
 0x12b   :  { %v197_v24 = vadd.f32 %v196_v22, %v103_v19  ;;  %v198_v25 = vpop.f32.mrb[2].mxu0 }
 0x12c   :  { %v254_v27 = vmul.f32 0.01, %v195_v21  ;;  %v199_v28 = vadd.f32 %v198_v25, %v99_v18  ;;  %v200_v29 = vpop.f32.mrb[3].mxu0  ;;  %vm246_vm1 = vcmp.gt.f32.partialorder %v195_v21, 0.0  ;;  %v343_v18 = vrot.slane %v338_v11, %v98_v15 }
 0x12d   :  { %v255_v30 = vmul.f32 0.01, %v197_v24  ;;  %v201_v31 = vadd.f32 %v200_v29, %v103_v19  ;;  %vm247_vm3 = vcmp.gt.f32.partialorder %v197_v24, 0.0 }
 0x12e   :  { %vm250_vm2 = vcmp.gt.f32.partialorder %v199_v28, 0.0  ;;  %v258_v32 = vmul.f32 0.01, %v199_v28  ;;  %v262_v36 = vsel %vm246_vm1, %v195_v21, %v254_v27 }
 0x12f   :  { %v259_v34 = vmul.f32 0.01, %v201_v31  ;;  %vm251_vm4 = vcmp.gt.f32.partialorder %v201_v31, 0.0  ;;  %v263_v39 = vsel %vm247_vm3, %v197_v24, %v255_v30 }
 0x130   :  { %v266_v37 = vsel %vm250_vm2, %v199_v28, %v258_v32 }
 0x131   :  { %v237_v38 = vpop.f32.mrb[4].mxu0  ;;  %v267_v40 = vsel %vm251_vm4, %v201_v31, %v259_v34  ;;  %v270_v41 = vpack.c.bf16 %v266_v37, %v262_v36 }
 0x132   :  { %v238_v42 = vadd.f32 %v237_v38, %v107_v33  ;;  %v239_v43 = vpop.f32.mrb[5].mxu0  ;;  %v271_v44 = vpack.c.bf16 %v267_v40, %v263_v39 }
 0x133   :  { %v240_v46 = vadd.f32 %v239_v43, %v111_v35  ;;  %v241_v47 = vpop.f32.mrb[6].mxu0 }
 0x134   :  { %v256_v49 = vmul.f32 0.01, %v238_v42  ;;  %v242_v50 = vadd.f32 %v241_v47, %v107_v33  ;;  %v243_v51 = vpop.f32.mrb[7].mxu0  ;;  %702 = vmatprep.mubr.bf16.mxu1 %v271_v44  ;;  %vm248_vm5 = vcmp.gt.f32.partialorder %v238_v42, 0.0  ;;  %v1049_v44 = vld [vmem:[%s1515_s6] ss:$0 sm:$0xff] }
 0x135   :  { %v257_v52 = vmul.f32 0.01, %v240_v46  ;;  %v244_v53 = vadd.f32 %v243_v51, %v111_v35  ;;  %703 = vmatmul.mubr.bf16.vlgmr.msra.gmra.mrb[0].mxu1 %v270_v41  ;;  %vm249_vm6 = vcmp.gt.f32.partialorder %v240_v46, 0.0 }
 0x136   :  { %vm252_vm7 = vcmp.gt.f32.partialorder %v242_v50, 0.0  ;;  %v260_v54 = vmul.f32 0.01, %v242_v50  ;;  %1076 = vmatpush3.bf16.msra.mxu1 %v1226_v45  ;;  %v264_v58 = vsel %vm248_vm5, %v238_v42, %v256_v49 }
 0x137   :  { %vm253_vm8 = vcmp.gt.f32.partialorder %v244_v53, 0.0  ;;  %v261_v56 = vmul.f32 0.01, %v244_v53  ;;  %1077 = vmatprep.subr.bf16.mxu1 %v1227_v48  ;;  %v265_v61 = vsel %vm249_vm6, %v240_v46, %v257_v52 }
 0x138   :  { %v268_v59 = vsel %vm252_vm7, %v242_v50, %v260_v54 }
 0x139   :  { %v272_v60 = vpack.c.bf16 %v268_v59, %v264_v58  ;;  %v269_v62 = vsel %vm253_vm8, %v244_v53, %v261_v56 }
 0x13a   :  { %v273_v63 = vpack.c.bf16 %v269_v62, %v265_v61  ;;  %1078 = vmatpush3.bf16.msra.mxu1 %v1228_v55 }
 0x13b   :  { %1079 = vmatprep.subr.bf16.mxu1 %v1229_v57 }
 0x13c   :  { %745 = vmatprep.mubr.bf16.mxu0 %v273_v63 }
 0x13d   :  { %746 = vmatmul.mubr.bf16.vlgmr.msra.gmra.mrb[8].mxu0 %v272_v60 }
 0x13e   :  { %1080 = vmatpush3.bf16.msra.mxu1 %v1230_v0 }
 0x13f   :  { %1081 = vmatprep.subr.bf16.mxu1 %v1231_v1 }
 0x142   :  { %1082 = vmatpush3.bf16.msra.mxu1 %v1232_v2 }
 0x143   :  { %1083 = vmatprep.subr.bf16.mxu1 %v1233_v3 }
 0x146   :  { %1084 = vmatpush3.bf16.msra.mxu1 %v1234_v4 }
 0x147   :  { %1085 = vmatprep.subr.bf16.mxu1 %v1235_v5 }
 0x14a   :  { %1086 = vmatpush3.bf16.msra.mxu1 %v1236_v6 }
 0x14b   :  { %1087 = vmatprep.subr.bf16.mxu1 %v1237_v7 }
 0x14e   :  { %1088 = vmatpush3.bf16.msra.mxu1 %v1238_v8 }
 0x14f   :  { %1089 = vmatprep.subr.bf16.mxu1 %v1239_v9 }
 0x152   :  { %1090 = vmatpush3.bf16.msra.mxu1 %v1240_v10 }
 0x208   :  { %v704_v12 = vpop.f32.mrb[0].mxu1 }
 0x209   :  { %v706_v13 = vpop.f32.mrb[1].mxu1  ;;  %v705_v21 = vadd.f32 %v704_v12, %v343_v18 }
 0x20a   :  { %v708_v16 = vpop.f32.mrb[2].mxu1  ;;  %v707_v22 = vadd.f32 %v706_v13, %v347_v20 }
 0x20b   :  { %v710_v19 = vpop.f32.mrb[3].mxu1  ;;  %v709_v24 = vadd.f32 %v708_v16, %v343_v18 }
 0x20c   :  { %v711_v27 = vadd.f32 %v710_v19, %v347_v20 }
 0x210   :  { %v747_v23 = vpop.f32.mrb[8].mxu0 }
 0x211   :  { %v748_v25 = vadd.f32 %v747_v23, %v705_v21  ;;  %v749_v26 = vpop.f32.mrb[9].mxu0 }
 0x212   :  { %v750_v28 = vadd.f32 %v749_v26, %v707_v22  ;;  %v751_v29 = vpop.f32.mrb[10].mxu0 }
 0x213   :  { %v760_v30 = vmul.f32 0.01, %v748_v25  ;;  %v752_v31 = vadd.f32 %v751_v29, %v709_v24  ;;  %v753_v32 = vpop.f32.mrb[11].mxu0  ;;  %vm756_vm9 = vcmp.gt.f32.partialorder %v748_v25, 0.0 }
 0x214   :  { %v761_v33 = vmul.f32 0.01, %v750_v28  ;;  %v754_v34 = vadd.f32 %v753_v32, %v711_v27  ;;  %vm757_vm10 = vcmp.gt.f32.partialorder %v750_v28, 0.0 }
 0x215   :  { %vm758_vm11 = vcmp.gt.f32.partialorder %v752_v31, 0.0  ;;  %v762_v15 = vmul.f32 0.01, %v752_v31  ;;  %v764_v17 = vsel %vm756_vm9, %v748_v25, %v760_v30 }
 0x216   :  { %vm759_vm12 = vcmp.gt.f32.partialorder %v754_v34, 0.0  ;;  %v763_v14 = vmul.f32 0.01, %v754_v34  ;;  %v765_v37 = vsel %vm757_vm10, %v750_v28, %v761_v33 }
 0x217   :  { %v766_v35 = vsel %vm758_vm11, %v752_v31, %v762_v15 }
 0x218   :  { %v768_v36 = vpack.c.bf16 %v766_v35, %v764_v17  ;;  %v767_v38 = vsel %vm759_vm12, %v754_v34, %v763_v14 }
 0x219   :  { %v769_v39 = vpack.c.bf16 %v767_v38, %v765_v37 }
 0x21b   :  { %937 = vmatprep.mubr.bf16.mxu1 %v769_v39 }
 0x21c   :  { %938 = vmatmul.mubr.bf16.vlgmr.msra.gmra.mrb[4].mxu1 %v768_v36 }
 0x2ef   :  { %v1091_v40 = vpop.f32.mrb[4].mxu1 }
 0x2f0   :  { %v1092_v41 = vpop.f32.mrb[5].mxu1 }
 0x2f1   :  { %v1093_v42 = vadd.f32 %v1092_v41, %v1091_v40  ;;  %v1094_v43 = vpop.f32.mrb[6].mxu1 }
 0x2f2   :  { %v1095_v45 = vpop.f32.mrb[7].mxu1 }
 0x2f3   :  { %v1096_v46 = vadd.f32 %v1095_v45, %v1094_v43  ;;  %v940_v47 = vadd.f32 %v1093_v42, %v1049_v44 }
 0x2f5   :  { %v943_v48 = vadd.f32 %v1096_v46, %v1049_v44 }
 0x2f7   :  { %v1073_v49 = vpack.c.bf16 %v943_v48, %v940_v47 }
 0x2f9   :  { %1074 = vst [vmem:[#allocation10] sm:$0xff] %v1073_v49  }
 0x2fa   :  { %960 = vsyncadd [#allocation4], 64  ;;  %s1370_s9 = smov [#allocation10]  }
 0x2fb   :  { %s961_s10 = sshll.u32 %s1370_s9, 4  ;;  %s962_s10 = int_to_ptr.vmem [resolvable:$true] %s961_s10 }
 0x2fc   :  { %s1329_s11 = scalar_lea.vmem %s962_s10, 64  ;;  %s1333_s12 = scalar_lea.vmem %s962_s10, 128 }
 0x2fd   :  { %p1330_p4 = scmp.ne.s32.totalorder %s962_s10, %s1329_s11  ;;  %p1334_p5 = scmp.lt.s32.totalorder %s962_s10, %s962_s10 }
 0x2fe   :  { %p1335_p6 = scmp.lt.s32.totalorder %s1333_s12, %s1329_s11 }
 0x300   :  { %p1336_p7 = por %p1335_p6, %p1334_p5 }
 0x302   :  { %p1337_p8 = pnand %p1336_p7, %p1330_p4 }
 0x304   :  { %1340 = shalt.err (!%p1337_p8)
}
 0x305   :  { %s1341_s14 = scalar_lea.hbm %s1516_s7, 64 }
 0x306   :  { %p1342_p9 = scmp.ne.s32.totalorder %s1516_s7, %s1341_s14  ;;  %p1345_p10 = scmp.lt.u32.totalorder %s1341_s14, %s1516_s7 }
 0x308   :  { %p1347_p11 = pnand %p1345_p10, %p1342_p9 }
 0x30a   :  { %1350 = shalt.err (!%p1347_p11)
}
 0x30b   :  { %967 = dma.vmem_to_hbm [thread:$0]  %s962_s10, 64, %s1516_s7, [#allocation4], %s1367_s3, %s1367_s3, %s1368_s25  }
 0x30c   :  { %1357 = dma.done.wait [#allocation4], 128  }
 0x30d   :  { %1358 = vsyncadd [#allocation4], 4294967168 }
 0x30e   :  { %971 = vsyncpa [#allocation3], 1 }
 0x30f   :  { %972 = vsyncpa [#allocation6], 1 }
 0x310   :  { %973 = vsyncpa [#allocation9], 1 }
 0x311   :  { %974 = vsyncpa [#allocation4], 1 }

</bundles_post_ra>
